<compile_context>
chip_gen: v7x
topology: tpu7x:2x2x1
jax: 0.10.0
libtpu: 0.0.40
codegen_flags: <defaults>
</compile_context>

<pallas_src>
import functools
import math

import jax
import jax.numpy as jnp
from jax.experimental import pallas as pl
from jax.experimental.pallas import tpu as pltpu


_INV_SQRT2 = 0.7071067811865476


def _gelu(y):
    # exact GELU (matches torch.nn.GELU default)
    return 0.5 * y * (1.0 + jax.lax.erf(y * _INV_SQRT2))


def _leaky(y):
    return jnp.where(y > 0, y, 0.2 * y)


# --------------------------------------------------------------------------
# Kernel 1: min/max graph + (conv⊕lin1) + lin2 + pos-emb + go + softmax-gram
# --------------------------------------------------------------------------

def _front_kernel(xp_ref, nd_ref, w1_ref, b1_ref, w2_ref, b2_ref,
                  pe_ref, gw_ref, gb_ref, g1_ref, g2_ref):
    # ---- graph 0: per-batch min/max normalization of the node matrix ----
    nd = nd_ref[0]                                               # (K, K)
    mn = jnp.min(jnp.min(nd, axis=1, keepdims=True), axis=0, keepdims=True)
    mx = jnp.max(jnp.max(nd, axis=1, keepdims=True), axis=0, keepdims=True)
    inv = pl.reciprocal(mx - mn + 1e-6, approx=True)
    g1_ref[0] = (nd - mn) * inv

    # ---- Conv1d(1,4) folded into lin1 (weights pre-folded) + GELU MLP ----
    # dropout layers are eval-mode identities
    xp = xp_ref[0]                                               # (K, P)
    h = jnp.dot(xp, w1_ref[...], preferred_element_type=jnp.float32) + b1_ref[...]
    h = _gelu(h)
    h = jnp.dot(h, w2_ref[...], preferred_element_type=jnp.float32) + b2_ref[...]
    h = _gelu(h)                                                 # (K, H)

    # ---- positional encoding + go linear + softmax + gram product ----
    # (the permute/permute/permute in the reference is algebraically just
    #  h + pos_emb.T broadcast over the batch)
    f = jnp.dot(h + pe_ref[...], gw_ref[...],
                preferred_element_type=jnp.float32) + gb_ref[...]
    f = f - jnp.max(f, axis=-1, keepdims=True)
    e = jnp.exp(f)
    p = e * pl.reciprocal(jnp.sum(e, axis=-1, keepdims=True), approx=True)
    # einsum('ijk,ipk->ijp', f, f) == f @ f^T per batch
    g2_ref[0] = jax.lax.dot_general(p, p, (((1,), (1,)), ((), ())),
                                    preferred_element_type=jnp.float32)


def front_pass(xp3, nodes, prep):
    """xp3: (B, K, P) zero-padded series, nodes: (B, K, K) -> (g1, g2)."""
    B, K, P = xp3.shape
    H4 = prep["w1c"].shape[1]
    H = prep["w2"].shape[1]
    args = (xp3, nodes, prep["w1c"], prep["b1c"], prep["w2"], prep["b2"],
            prep["pe_t"], prep["go_w"], prep["go_b"])

    def full(a):
        return pl.BlockSpec(a.shape, lambda i, n=a.ndim: (0,) * n)

    in_specs = ([pl.BlockSpec((1, K, P), lambda i: (i, 0, 0)),
                 pl.BlockSpec((1, K, K), lambda i: (i, 0, 0))]
                + [full(a) for a in args[2:]])
    out_spec = pl.BlockSpec((1, K, K), lambda i: (i, 0, 0))

    flops = 2 * B * K * (P * H4 + H4 * H + H * H + H * K)
    trans = B * K * (H4 + 2 * H)                      # GELU erf x2 + softmax exp
    bytes_acc = 4 * (sum(int(a.size) for a in args) + 2 * B * K * K)

    return pl.pallas_call(
        _front_kernel,
        out_shape=(jax.ShapeDtypeStruct((B, K, K), jnp.float32),
                   jax.ShapeDtypeStruct((B, K, K), jnp.float32)),
        grid=(B,),
        in_specs=in_specs,
        out_specs=(out_spec, out_spec),
        compiler_params=pltpu.CompilerParams(dimension_semantics=("parallel",)),
        cost_estimate=pl.CostEstimate(flops=int(flops), transcendentals=int(trans),
                                      bytes_accessed=int(bytes_acc)),
    )(*args)


# --------------------------------------------------------------------------
# Kernel 2: fused GNNPredictor over all graphs at once + output head
# --------------------------------------------------------------------------

def _pred_head_kernel(g_ref, n_ref,
                      g1w1_ref, g1b1_ref, g1w2_ref, g1b2_ref,
                      bn1s_ref, bn1t_ref,
                      g2w1_ref, g2b1_ref, g2w2_ref, g2b2_ref,
                      bn2s_ref, bn2t_ref,
                      f1w_ref, f1b_ref, f2w_ref, f2b_ref, f3w_ref, f3b_ref,
                      o1w_ref, o1b_ref, o2w_ref, o2b_ref,
                      o_ref, *, K, G, B):
    # rows of g/n are ordered (node j, graph g, batch b) with b fastest.
    def mm(x, w_ref, b_ref):
        return jnp.dot(x, w_ref[...], preferred_element_type=jnp.float32) + b_ref[...]

    g = g_ref[...]                                             # (K*G*B, K)
    # einsum('ijk,ijp->ijp', m, x) == rowsum_k(m) * x
    rs = jnp.sum(g, axis=-1, keepdims=True)                    # (K*G*B, 1)
    x = rs * n_ref[...]
    x = _leaky(mm(x, g1w1_ref, g1b1_ref))
    x = _leaky(mm(x, g1w2_ref, g1b2_ref))
    x = x * bn1s_ref[...] + bn1t_ref[...]                      # eval-mode BN1
    x = rs * x
    x = _leaky(mm(x, g2w1_ref, g2b1_ref))
    x = _leaky(mm(x, g2w2_ref, g2b2_ref))
    x = x * bn2s_ref[...] + bn2t_ref[...]                      # (K*G*B, 8)

    # view(bz, -1): concatenate the per-node 8-channel blocks along lanes
    gb = G * B
    xf = jnp.concatenate([x[j * gb:(j + 1) * gb, :] for j in range(K)], axis=-1)
    y = _leaky(mm(xf, f1w_ref, f1b_ref))
    y = _leaky(mm(y, f2w_ref, f2b_ref))
    y = mm(y, f3w_ref, f3b_ref)                                # (G*B, out)

    # torch.cat(outputs, dim=1) across the G predictor outputs
    m = jnp.concatenate([y[gg * B:(gg + 1) * B, :] for gg in range(G)], axis=-1)
    z = _gelu(mm(m, o1w_ref, o1b_ref))
    o_ref[...] = mm(z, o2w_ref, o2b_ref)


def predictor_head_pass(gflat, nflat, pr, head, *, K, G, B):
    out_size = head["out2_w"].shape[1]
    args = (gflat, nflat,
            pr["g1w1"], pr["g1b1"], pr["g1w2"], pr["g1b2"],
            pr["bn1_scale"], pr["bn1_shift"],
            pr["g2w1"], pr["g2b1"], pr["g2w2"], pr["g2b2"],
            pr["bn2_scale"], pr["bn2_shift"],
            pr["f1w"], pr["f1b"], pr["f2w"], pr["f2b"], pr["f3w"], pr["f3b"],
            head["out1_w"], head["out1_b"], head["out2_w"], head["out2_b"])

    M = gflat.shape[0]
    GB = G * B

    def mmf(rows, w):
        return 2 * rows * int(w.shape[0]) * int(w.shape[1])

    flops = (mmf(M, pr["g1w1"]) + mmf(M, pr["g1w2"]) + mmf(M, pr["g2w1"])
             + mmf(M, pr["g2w2"]) + mmf(GB, pr["f1w"]) + mmf(GB, pr["f2w"])
             + mmf(GB, pr["f3w"]) + mmf(B, head["out1_w"]) + mmf(B, head["out2_w"]))
    trans = B * int(head["out1_w"].shape[1])
    bytes_acc = 4 * (sum(int(a.size) for a in args) + B * out_size)

    return pl.pallas_call(
        functools.partial(_pred_head_kernel, K=K, G=G, B=B),
        out_shape=jax.ShapeDtypeStruct((B, out_size), jnp.float32),
        cost_estimate=pl.CostEstimate(flops=int(flops), transcendentals=int(trans),
                                      bytes_accessed=int(bytes_acc)),
    )(*args)


# --------------------------------------------------------------------------
# Parameters (deterministic, PyTorch-like uniform(-1/sqrt(fan_in), ...) init)
# --------------------------------------------------------------------------

def _sinusoidal_pe(hidden, k):
    # TODO(synk): PositionalEncoding class definition is not provided in the
    # reference; a deterministic sinusoidal (hidden, roi_num) table is used.
    pos = jnp.arange(k, dtype=jnp.float32)[None, :]
    i = jnp.arange(hidden, dtype=jnp.float32)[:, None]
    angle = pos / jnp.power(10000.0, (2.0 * jnp.floor(i / 2.0)) / hidden)
    return jnp.where((jnp.arange(hidden)[:, None] % 2) == 0,
                     jnp.sin(angle), jnp.cos(angle)).astype(jnp.float32)


def init_params(key, *, d, k, hidden, ksz, out_size, num_layer, pred_hidden=256):
    keys = iter(jax.random.split(key, 32))

    def lin(fan_in, fan_out):
        kw, kb = jax.random.split(next(keys))
        bound = 1.0 / math.sqrt(fan_in)
        w = jax.random.uniform(kw, (fan_in, fan_out), jnp.float32, -bound, bound)
        bb = jax.random.uniform(kb, (fan_out,), jnp.float32, -bound, bound)
        return w, bb

    p = {}
    # Conv1d(1, 4, ksz)
    kw, kb = jax.random.split(next(keys))
    cb = 1.0 / math.sqrt(1 * ksz)
    p["conv_w"] = jax.random.uniform(kw, (4, ksz), jnp.float32, -cb, cb)
    p["conv_b"] = jax.random.uniform(kb, (4,), jnp.float32, -cb, cb)
    # self.linear: Linear(4d, 4h) GELU dp Linear(4h, h) GELU dp
    p["lin1_w"], p["lin1_b"] = lin(d * 4, hidden * 4)
    p["lin2_w"], p["lin2_b"] = lin(hidden * 4, hidden)
    # self.go
    p["go_w"], p["go_b"] = lin(hidden, hidden)
    p["pos_emb"] = _sinusoidal_pe(hidden, k)

    # GNNPredictor (deep-copied in the reference -> identical weights in all copies)
    pr = {}
    pr["g1w1"], pr["g1b1"] = lin(k, pred_hidden)         # node_input_dim == roi_num
    pr["g1w2"], pr["g1b2"] = lin(pred_hidden, pred_hidden)
    pr["bn1_gamma"] = jnp.ones((pred_hidden,), jnp.float32)
    pr["bn1_beta"] = jnp.zeros((pred_hidden,), jnp.float32)
    pr["bn1_mean"] = jnp.zeros((pred_hidden,), jnp.float32)
    pr["bn1_var"] = jnp.ones((pred_hidden,), jnp.float32)
    pr["g2w1"], pr["g2b1"] = lin(pred_hidden, 64)
    pr["g2w2"], pr["g2b2"] = lin(64, 8)
    pr["bn2_gamma"] = jnp.ones((8,), jnp.float32)
    pr["bn2_beta"] = jnp.zeros((8,), jnp.float32)
    pr["bn2_mean"] = jnp.zeros((8,), jnp.float32)
    pr["bn2_var"] = jnp.ones((8,), jnp.float32)
    pr["f1w"], pr["f1b"] = lin(8 * k, 256)
    pr["f2w"], pr["f2b"] = lin(256, 32)
    pr["f3w"], pr["f3b"] = lin(32, out_size)
    p["pred"] = pr

    # output head
    total = out_size * (num_layer + 1)
    p["out1_w"], p["out1_b"] = lin(total, total // 2)
    p["out2_w"], p["out2_b"] = lin(total // 2, out_size)
    return p


def prepare_params(p, *, d, ksz):
    """One-time weight preprocessing: fold Conv1d into lin1, precompute the
    eval-mode BatchNorm affines, reshape biases to (1, N)."""
    pad = ksz // 2
    P = d + 2 * pad
    oc, H4 = p["conv_w"].shape[0], p["lin1_w"].shape[1]
    lw = p["lin1_w"].reshape(oc, d, H4)                     # [channel, time, out]
    w1c = jnp.zeros((P, H4), jnp.float32)
    for s in range(ksz):
        w1c = w1c.at[s:s + d, :].add(jnp.einsum("c,ctn->tn", p["conv_w"][:, s], lw))
    b1c = p["lin1_b"] + jnp.einsum("c,ctn->n", p["conv_b"], lw)

    def bn_affine(prefix, pr):
        scale = pr[prefix + "_gamma"] * jax.lax.rsqrt(pr[prefix + "_var"] + 1e-5)
        shift = pr[prefix + "_beta"] - pr[prefix + "_mean"] * scale
        return scale.reshape(1, -1), shift.reshape(1, -1)

    pr = p["pred"]
    bn1s, bn1t = bn_affine("bn1", pr)
    bn2s, bn2t = bn_affine("bn2", pr)
    row = lambda v: v.reshape(1, -1)

    return {
        "w1c": w1c, "b1c": row(b1c),
        "w2": p["lin2_w"], "b2": row(p["lin2_b"]),
        "pe_t": p["pos_emb"].T,                              # (roi, hidden)
        "go_w": p["go_w"], "go_b": row(p["go_b"]),
        "pred": {
            "g1w1": pr["g1w1"], "g1b1": row(pr["g1b1"]),
            "g1w2": pr["g1w2"], "g1b2": row(pr["g1b2"]),
            "bn1_scale": bn1s, "bn1_shift": bn1t,
            "g2w1": pr["g2w1"], "g2b1": row(pr["g2b1"]),
            "g2w2": pr["g2w2"], "g2b2": row(pr["g2b2"]),
            "bn2_scale": bn2s, "bn2_shift": bn2t,
            "f1w": pr["f1w"], "f1b": row(pr["f1b"]),
            "f2w": pr["f2w"], "f2b": row(pr["f2b"]),
            "f3w": pr["f3w"], "f3b": row(pr["f3b"]),
        },
        "head": {
            "out1_w": p["out1_w"], "out1_b": row(p["out1_b"]),
            "out2_w": p["out2_w"], "out2_b": row(p["out2_b"]),
        },
    }


# --------------------------------------------------------------------------
# Forward pass
# --------------------------------------------------------------------------

def mlcgcn_forward(prep, x, nodes, *, ksz, num_layer):
    b, k, d = x.shape
    pad = ksz // 2

    # zero-pad the time series once; conv is folded into the first matmul
    xp = jnp.pad(x.reshape(b * k, d), ((0, 0), (pad, pad))).reshape(b, k, d + 2 * pad)

    g1, g2 = front_pass(xp, nodes, prep)

    # TODO(synk): STFE class definition is not provided in the reference; the
    # spatio-temporal block is an identity stub, so every layer produces the
    # same graph -> compute it once and reuse.
    graphs = [g1] + [g2] * num_layer
    G = num_layer + 1

    # Stack all graphs so the predictor runs ONCE with M = k*G*b matmul rows.
    # Rows are ordered (node j, graph g, batch b), b fastest.
    stacked = jnp.stack(graphs, axis=0)                              # (G, b, k, k)
    gflat = jnp.transpose(stacked, (2, 0, 1, 3)).reshape(k * G * b, k)
    nflat = jnp.broadcast_to(jnp.transpose(nodes, (1, 0, 2))[:, None],
                             (k, G, b, k)).reshape(k * G * b, k)

    out = predictor_head_pass(gflat, nflat, prep["pred"], prep["head"],
                              K=k, G=G, B=b)
    return out, graphs


# --------------------------------------------------------------------------

if __name__ == "__main__":
    B, K, D = 2, 8, 16            # batch, roi_num, time_series
    HIDDEN, KSZ, NUM_LAYER, OUT = 16, 3, 2, 4

    params = init_params(jax.random.PRNGKey(0), d=D, k=K, hidden=HIDDEN,
                         ksz=KSZ, out_size=OUT, num_layer=NUM_LAYER)
    prep = prepare_params(params, d=D, ksz=KSZ)

    kx, kn = jax.random.split(jax.random.PRNGKey(0))
    x = jax.random.normal(kx, (B, K, D), jnp.float32)
    nodes = jax.random.normal(kn, (B, K, K), jnp.float32)  # node_feature_dim == roi_num

    fwd = jax.jit(functools.partial(mlcgcn_forward, ksz=KSZ, num_layer=NUM_LAYER))
    out, graphs = fwd(prep, x, nodes)
    out = jax.block_until_ready(out)
    graphs = [jax.block_until_ready(g) for g in graphs]

    assert out.shape == (B, OUT)
    assert len(graphs) == NUM_LAYER + 1
    assert all(g.shape == (B, K, K) for g in graphs)
    assert bool(jnp.all(jnp.isfinite(out)))
    print("KERNEL_OK")
</pallas_src>

<mosaic_0001>
module attributes {stable_mosaic.version = 11 : i64} {
  func.func @_front_kernel(%arg0: i32, %arg1: memref<1x8x18xf32, #tpu.memory_space<vmem>>, %arg2: memref<1x8x8xf32, #tpu.memory_space<vmem>>, %arg3: memref<18x64xf32, #tpu.memory_space<vmem>>, %arg4: memref<1x64xf32, #tpu.memory_space<vmem>>, %arg5: memref<64x16xf32, #tpu.memory_space<vmem>>, %arg6: memref<1x16xf32, #tpu.memory_space<vmem>>, %arg7: memref<8x16xf32, #tpu.memory_space<vmem>>, %arg8: memref<16x16xf32, #tpu.memory_space<vmem>>, %arg9: memref<1x16xf32, #tpu.memory_space<vmem>>, %arg10: memref<1x8x8xf32, #tpu.memory_space<vmem>>, %arg11: memref<1x8x8xf32, #tpu.memory_space<vmem>>) attributes {dimension_semantics = [#tpu.dimension_semantics<parallel>], iteration_bounds = array<i64: 2>, scalar_prefetch = 0 : i64, scratch_operands = 0 : i64, tpu.core_type = #tpu.core_type<tc>, window_params = [{transform_indices = @transform_0, window_bounds = array<i64: 1, 8, 18>}, {transform_indices = @transform_1, window_bounds = array<i64: 1, 8, 8>}, {pipeline_mode = #tpu.pipeline_mode<synchronous>, transform_indices = @transform_2, window_bounds = array<i64: 18, 64>}, {pipeline_mode = #tpu.pipeline_mode<synchronous>, transform_indices = @transform_3, window_bounds = array<i64: 1, 64>}, {pipeline_mode = #tpu.pipeline_mode<synchronous>, transform_indices = @transform_4, window_bounds = array<i64: 64, 16>}, {pipeline_mode = #tpu.pipeline_mode<synchronous>, transform_indices = @transform_5, window_bounds = array<i64: 1, 16>}, {pipeline_mode = #tpu.pipeline_mode<synchronous>, transform_indices = @transform_6, window_bounds = array<i64: 8, 16>}, {pipeline_mode = #tpu.pipeline_mode<synchronous>, transform_indices = @transform_7, window_bounds = array<i64: 16, 16>}, {pipeline_mode = #tpu.pipeline_mode<synchronous>, transform_indices = @transform_8, window_bounds = array<i64: 1, 16>}, {transform_indices = @transform_9, window_bounds = array<i64: 1, 8, 8>}, {transform_indices = @transform_10, window_bounds = array<i64: 1, 8, 8>}]} {
    %c0 = arith.constant 0 : index
    %c0_0 = arith.constant 0 : index
    %c0_1 = arith.constant 0 : index
    %0 = vector.load %arg2[%c0, %c0_0, %c0_1] : memref<1x8x8xf32, #tpu.memory_space<vmem>>, vector<1x8x8xf32>
    %1 = vector.shape_cast %0 : vector<1x8x8xf32> to vector<8x8xf32>
    %cst = arith.constant dense<0x7F800000> : vector<8xf32>
    %2 = vector.multi_reduction <minimumf>, %1, %cst [1] : vector<8x8xf32> to vector<8xf32>
    %3 = vector.shape_cast %2 : vector<8xf32> to vector<8x1xf32>
    %cst_2 = arith.constant dense<0x7F800000> : vector<1xf32>
    %4 = vector.multi_reduction <minimumf>, %3, %cst_2 [0] : vector<8x1xf32> to vector<1xf32>
    %5 = vector.shape_cast %4 : vector<1xf32> to vector<1x1xf32>
    %cst_3 = arith.constant dense<0xFF800000> : vector<8xf32>
    %6 = vector.multi_reduction <maximumf>, %1, %cst_3 [1] : vector<8x8xf32> to vector<8xf32>
    %7 = vector.shape_cast %6 : vector<8xf32> to vector<8x1xf32>
    %cst_4 = arith.constant dense<0xFF800000> : vector<1xf32>
    %8 = vector.multi_reduction <maximumf>, %7, %cst_4 [0] : vector<8x1xf32> to vector<1xf32>
    %9 = vector.shape_cast %8 : vector<1xf32> to vector<1x1xf32>
    %10 = arith.subf %9, %5 : vector<1x1xf32>
    %cst_5 = arith.constant 9.99999997E-7 : f32
    %11 = vector.broadcast %cst_5 : f32 to vector<1x1xf32>
    %12 = arith.addf %10, %11 : vector<1x1xf32>
    %13 = tpu.reciprocal %12 {approx = true} : vector<1x1xf32> -> vector<1x1xf32>
    %14 = vector.broadcast %5 : vector<1x1xf32> to vector<8x8xf32>
    %15 = arith.subf %1, %14 : vector<8x8xf32>
    %16 = vector.broadcast %13 : vector<1x1xf32> to vector<8x8xf32>
    %17 = arith.mulf %15, %16 : vector<8x8xf32>
    %c0_6 = arith.constant 0 : index
    %c0_7 = arith.constant 0 : index
    %c0_8 = arith.constant 0 : index
    %18 = vector.load %arg10[%c0_6, %c0_7, %c0_8] : memref<1x8x8xf32, #tpu.memory_space<vmem>>, vector<1x8x8xf32>
    %19 = vector.shape_cast %18 : vector<1x8x8xf32> to vector<8x8xf32>
    %20 = vector.shape_cast %17 : vector<8x8xf32> to vector<1x8x8xf32>
    tpu.vector_store %arg10[%c0_6, %c0_7, %c0_8], %20 {strides = array<i32>} : memref<1x8x8xf32, #tpu.memory_space<vmem>>, vector<1x8x8xf32>,
    %c0_9 = arith.constant 0 : index
    %c0_10 = arith.constant 0 : index
    %c0_11 = arith.constant 0 : index
    %21 = vector.load %arg1[%c0_9, %c0_10, %c0_11] : memref<1x8x18xf32, #tpu.memory_space<vmem>>, vector<1x8x18xf32>
    %22 = vector.shape_cast %21 : vector<1x8x18xf32> to vector<8x18xf32>
    %c0_12 = arith.constant 0 : index
    %c0_13 = arith.constant 0 : index
    %23 = vector.load %arg3[%c0_12, %c0_13] : memref<18x64xf32, #tpu.memory_space<vmem>>, vector<18x64xf32>
    %cst_14 = arith.constant dense<0.000000e+00> : vector<8x64xf32>
    %24 = tpu.matmul %22, %23, %cst_14 {dimension_numbers = #tpu.dot_dimension_numbers<[1], [0], [0], [1], [0, 0, 1, 1], [], []>} : vector<8x18xf32>, vector<18x64xf32>, vector<8x64xf32> -> vector<8x64xf32>
    %c0_15 = arith.constant 0 : index
    %c0_16 = arith.constant 0 : index
    %25 = vector.load %arg4[%c0_15, %c0_16] : memref<1x64xf32, #tpu.memory_space<vmem>>, vector<1x64xf32>
    %26 = vector.broadcast %25 : vector<1x64xf32> to vector<8x64xf32>
    %27 = arith.addf %24, %26 : vector<8x64xf32>
    %cst_17 = arith.constant 5.000000e-01 : f32
    %28 = vector.broadcast %cst_17 : f32 to vector<8x64xf32>
    %29 = arith.mulf %28, %27 : vector<8x64xf32>
    %cst_18 = arith.constant 0.707106769 : f32
    %30 = vector.broadcast %cst_18 : f32 to vector<8x64xf32>
    %31 = arith.mulf %27, %30 : vector<8x64xf32>
    %32 = math.erf %31 : vector<8x64xf32>
    %cst_19 = arith.constant 1.000000e+00 : f32
    %33 = vector.broadcast %cst_19 : f32 to vector<8x64xf32>
    %34 = arith.addf %33, %32 : vector<8x64xf32>
    %35 = arith.mulf %29, %34 : vector<8x64xf32>
    %c0_20 = arith.constant 0 : index
    %c0_21 = arith.constant 0 : index
    %36 = vector.load %arg5[%c0_20, %c0_21] : memref<64x16xf32, #tpu.memory_space<vmem>>, vector<64x16xf32>
    %cst_22 = arith.constant dense<0.000000e+00> : vector<8x16xf32>
    %37 = tpu.matmul %35, %36, %cst_22 {dimension_numbers = #tpu.dot_dimension_numbers<[1], [0], [0], [1], [0, 0, 1, 1], [], []>} : vector<8x64xf32>, vector<64x16xf32>, vector<8x16xf32> -> vector<8x16xf32>
    %c0_23 = arith.constant 0 : index
    %c0_24 = arith.constant 0 : index
    %38 = vector.load %arg6[%c0_23, %c0_24] : memref<1x16xf32, #tpu.memory_space<vmem>>, vector<1x16xf32>
    %39 = vector.broadcast %38 : vector<1x16xf32> to vector<8x16xf32>
    %40 = arith.addf %37, %39 : vector<8x16xf32>
    %cst_25 = arith.constant 5.000000e-01 : f32
    %41 = vector.broadcast %cst_25 : f32 to vector<8x16xf32>
    %42 = arith.mulf %41, %40 : vector<8x16xf32>
    %cst_26 = arith.constant 0.707106769 : f32
    %43 = vector.broadcast %cst_26 : f32 to vector<8x16xf32>
    %44 = arith.mulf %40, %43 : vector<8x16xf32>
    %45 = math.erf %44 : vector<8x16xf32>
    %cst_27 = arith.constant 1.000000e+00 : f32
    %46 = vector.broadcast %cst_27 : f32 to vector<8x16xf32>
    %47 = arith.addf %46, %45 : vector<8x16xf32>
    %48 = arith.mulf %42, %47 : vector<8x16xf32>
    %c0_28 = arith.constant 0 : index
    %c0_29 = arith.constant 0 : index
    %49 = vector.load %arg7[%c0_28, %c0_29] : memref<8x16xf32, #tpu.memory_space<vmem>>, vector<8x16xf32>
    %50 = arith.addf %48, %49 : vector<8x16xf32>
    %c0_30 = arith.constant 0 : index
    %c0_31 = arith.constant 0 : index
    %51 = vector.load %arg8[%c0_30, %c0_31] : memref<16x16xf32, #tpu.memory_space<vmem>>, vector<16x16xf32>
    %cst_32 = arith.constant dense<0.000000e+00> : vector<8x16xf32>
    %52 = tpu.matmul %50, %51, %cst_32 {dimension_numbers = #tpu.dot_dimension_numbers<[1], [0], [0], [1], [0, 0, 1, 1], [], []>} : vector<8x16xf32>, vector<16x16xf32>, vector<8x16xf32> -> vector<8x16xf32>
    %c0_33 = arith.constant 0 : index
    %c0_34 = arith.constant 0 : index
    %53 = vector.load %arg9[%c0_33, %c0_34] : memref<1x16xf32, #tpu.memory_space<vmem>>, vector<1x16xf32>
    %54 = vector.broadcast %53 : vector<1x16xf32> to vector<8x16xf32>
    %55 = arith.addf %52, %54 : vector<8x16xf32>
    %cst_35 = arith.constant dense<0xFF800000> : vector<8xf32>
    %56 = vector.multi_reduction <maximumf>, %55, %cst_35 [1] : vector<8x16xf32> to vector<8xf32>
    %57 = vector.shape_cast %56 : vector<8xf32> to vector<8x1xf32>
    %58 = vector.broadcast %57 : vector<8x1xf32> to vector<8x16xf32>
    %59 = arith.subf %55, %58 : vector<8x16xf32>
    %60 = math.exp %59 : vector<8x16xf32>
    %cst_36 = arith.constant dense<0.000000e+00> : vector<8xf32>
    %61 = vector.multi_reduction <add>, %60, %cst_36 [1] : vector<8x16xf32> to vector<8xf32>
    %62 = vector.shape_cast %61 : vector<8xf32> to vector<8x1xf32>
    %63 = tpu.reciprocal %62 {approx = true} : vector<8x1xf32> -> vector<8x1xf32>
    %64 = vector.broadcast %63 : vector<8x1xf32> to vector<8x16xf32>
    %65 = arith.mulf %60, %64 : vector<8x16xf32>
    %cst_37 = arith.constant dense<0.000000e+00> : vector<8x8xf32>
    %66 = tpu.matmul %65, %65, %cst_37 {dimension_numbers = #tpu.dot_dimension_numbers<[1], [1], [0], [0], [0, 0, 1, 0], [], []>} : vector<8x16xf32>, vector<8x16xf32>, vector<8x8xf32> -> vector<8x8xf32>
    %c0_38 = arith.constant 0 : index
    %c0_39 = arith.constant 0 : index
    %c0_40 = arith.constant 0 : index
    %67 = vector.load %arg11[%c0_38, %c0_39, %c0_40] : memref<1x8x8xf32, #tpu.memory_space<vmem>>, vector<1x8x8xf32>
    %68 = vector.shape_cast %67 : vector<1x8x8xf32> to vector<8x8xf32>
    %69 = vector.shape_cast %66 : vector<8x8xf32> to vector<1x8x8xf32>
    tpu.vector_store %arg11[%c0_38, %c0_39, %c0_40], %69 {strides = array<i32>} : memref<1x8x8xf32, #tpu.memory_space<vmem>>, vector<1x8x8xf32>,
    return
  }
  func.func @transform_0(%arg0: i32) -> (i32, i32, i32) {
    %c0_i32 = arith.constant 0 : i32
    %c0_i32_0 = arith.constant 0 : i32
    %c0_i32_1 = arith.constant 0 : i32
    return %arg0, %c0_i32, %c0_i32_0 : i32, i32, i32
  }
  func.func @transform_1(%arg0: i32) -> (i32, i32, i32) {
    %c0_i32 = arith.constant 0 : i32
    %c0_i32_0 = arith.constant 0 : i32
    %c0_i32_1 = arith.constant 0 : i32
    return %arg0, %c0_i32, %c0_i32_0 : i32, i32, i32
  }
  func.func @transform_2(%arg0: i32) -> (i32, i32) {
    %c0_i32 = arith.constant 0 : i32
    %c0_i32_0 = arith.constant 0 : i32
    %c0_i32_1 = arith.constant 0 : i32
    return %c0_i32, %c0_i32_0 : i32, i32
  }
  func.func @transform_3(%arg0: i32) -> (i32, i32) {
    %c0_i32 = arith.constant 0 : i32
    %c0_i32_0 = arith.constant 0 : i32
    %c0_i32_1 = arith.constant 0 : i32
    return %c0_i32, %c0_i32_0 : i32, i32
  }
  func.func @transform_4(%arg0: i32) -> (i32, i32) {
    %c0_i32 = arith.constant 0 : i32
    %c0_i32_0 = arith.constant 0 : i32
    %c0_i32_1 = arith.constant 0 : i32
    return %c0_i32, %c0_i32_0 : i32, i32
  }
  func.func @transform_5(%arg0: i32) -> (i32, i32) {
    %c0_i32 = arith.constant 0 : i32
    %c0_i32_0 = arith.constant 0 : i32
    %c0_i32_1 = arith.constant 0 : i32
    return %c0_i32, %c0_i32_0 : i32, i32
  }
  func.func @transform_6(%arg0: i32) -> (i32, i32) {
    %c0_i32 = arith.constant 0 : i32
    %c0_i32_0 = arith.constant 0 : i32
    %c0_i32_1 = arith.constant 0 : i32
    return %c0_i32, %c0_i32_0 : i32, i32
  }
  func.func @transform_7(%arg0: i32) -> (i32, i32) {
    %c0_i32 = arith.constant 0 : i32
    %c0_i32_0 = arith.constant 0 : i32
    %c0_i32_1 = arith.constant 0 : i32
    return %c0_i32, %c0_i32_0 : i32, i32
  }
  func.func @transform_8(%arg0: i32) -> (i32, i32) {
    %c0_i32 = arith.constant 0 : i32
    %c0_i32_0 = arith.constant 0 : i32
    %c0_i32_1 = arith.constant 0 : i32
    return %c0_i32, %c0_i32_0 : i32, i32
  }
  func.func @transform_9(%arg0: i32) -> (i32, i32, i32) {
    %c0_i32 = arith.constant 0 : i32
    %c0_i32_0 = arith.constant 0 : i32
    %c0_i32_1 = arith.constant 0 : i32
    return %arg0, %c0_i32, %c0_i32_0 : i32, i32, i32
  }
  func.func @transform_10(%arg0: i32) -> (i32, i32, i32) {
    %c0_i32 = arith.constant 0 : i32
    %c0_i32_0 = arith.constant 0 : i32
    %c0_i32_1 = arith.constant 0 : i32
    return %arg0, %c0_i32, %c0_i32_0 : i32, i32, i32
  }
}

module attributes {stable_mosaic.version = 11 : i64} {
  func.func @_pred_head_kernel(%arg0: memref<48x8xf32, #tpu.memory_space<vmem>>, %arg1: memref<48x8xf32, #tpu.memory_space<vmem>>, %arg2: memref<8x256xf32, #tpu.memory_space<vmem>>, %arg3: memref<1x256xf32, #tpu.memory_space<vmem>>, %arg4: memref<256x256xf32, #tpu.memory_space<vmem>>, %arg5: memref<1x256xf32, #tpu.memory_space<vmem>>, %arg6: memref<1x256xf32, #tpu.memory_space<vmem>>, %arg7: memref<1x256xf32, #tpu.memory_space<vmem>>, %arg8: memref<256x64xf32, #tpu.memory_space<vmem>>, %arg9: memref<1x64xf32, #tpu.memory_space<vmem>>, %arg10: memref<64x8xf32, #tpu.memory_space<vmem>>, %arg11: memref<1x8xf32, #tpu.memory_space<vmem>>, %arg12: memref<1x8xf32, #tpu.memory_space<vmem>>, %arg13: memref<1x8xf32, #tpu.memory_space<vmem>>, %arg14: memref<64x256xf32, #tpu.memory_space<vmem>>, %arg15: memref<1x256xf32, #tpu.memory_space<vmem>>, %arg16: memref<256x32xf32, #tpu.memory_space<vmem>>, %arg17: memref<1x32xf32, #tpu.memory_space<vmem>>, %arg18: memref<32x4xf32, #tpu.memory_space<vmem>>, %arg19: memref<1x4xf32, #tpu.memory_space<vmem>>, %arg20: memref<12x6xf32, #tpu.memory_space<vmem>>, %arg21: memref<1x6xf32, #tpu.memory_space<vmem>>, %arg22: memref<6x4xf32, #tpu.memory_space<vmem>>, %arg23: memref<1x4xf32, #tpu.memory_space<vmem>>, %arg24: memref<2x4xf32, #tpu.memory_space<vmem>>) attributes {dimension_semantics = [], scalar_prefetch = 0 : i64, scratch_operands = 0 : i64, tpu.core_type = #tpu.core_type<tc>} {
    %c0 = arith.constant 0 : index
    %c0_0 = arith.constant 0 : index
    %0 = vector.load %arg0[%c0, %c0_0] : memref<48x8xf32, #tpu.memory_space<vmem>>, vector<48x8xf32>
    %cst = arith.constant dense<0.000000e+00> : vector<48xf32>
    %1 = vector.multi_reduction <add>, %0, %cst [1] : vector<48x8xf32> to vector<48xf32>
    %2 = vector.shape_cast %1 : vector<48xf32> to vector<48x1xf32>
    %c0_1 = arith.constant 0 : index
    %c0_2 = arith.constant 0 : index
    %3 = vector.load %arg1[%c0_1, %c0_2] : memref<48x8xf32, #tpu.memory_space<vmem>>, vector<48x8xf32>
    %4 = vector.broadcast %2 : vector<48x1xf32> to vector<48x8xf32>
    %5 = arith.mulf %4, %3 : vector<48x8xf32>
    %c0_3 = arith.constant 0 : index
    %c0_4 = arith.constant 0 : index
    %6 = vector.load %arg2[%c0_3, %c0_4] : memref<8x256xf32, #tpu.memory_space<vmem>>, vector<8x256xf32>
    %cst_5 = arith.constant dense<0.000000e+00> : vector<48x256xf32>
    %7 = tpu.matmul %5, %6, %cst_5 {dimension_numbers = #tpu.dot_dimension_numbers<[1], [0], [0], [1], [0, 0, 1, 1], [], []>} : vector<48x8xf32>, vector<8x256xf32>, vector<48x256xf32> -> vector<48x256xf32>
    %c0_6 = arith.constant 0 : index
    %c0_7 = arith.constant 0 : index
    %8 = vector.load %arg3[%c0_6, %c0_7] : memref<1x256xf32, #tpu.memory_space<vmem>>, vector<1x256xf32>
    %9 = vector.broadcast %8 : vector<1x256xf32> to vector<48x256xf32>
    %10 = arith.addf %7, %9 : vector<48x256xf32>
    %cst_8 = arith.constant 0.000000e+00 : f32
    %11 = vector.broadcast %cst_8 : f32 to vector<48x256xf32>
    %12 = arith.cmpf ogt, %10, %11 : vector<48x256xf32>
    %cst_9 = arith.constant 2.000000e-01 : f32
    %13 = vector.broadcast %cst_9 : f32 to vector<48x256xf32>
    %14 = arith.mulf %13, %10 : vector<48x256xf32>
    %15 = arith.select %12, %10, %14 : vector<48x256xi1>, vector<48x256xf32>
    %c0_10 = arith.constant 0 : index
    %c0_11 = arith.constant 0 : index
    %16 = vector.load %arg4[%c0_10, %c0_11] : memref<256x256xf32, #tpu.memory_space<vmem>>, vector<256x256xf32>
    %cst_12 = arith.constant dense<0.000000e+00> : vector<48x256xf32>
    %17 = tpu.matmul %15, %16, %cst_12 {dimension_numbers = #tpu.dot_dimension_numbers<[1], [0], [0], [1], [0, 0, 1, 1], [], []>} : vector<48x256xf32>, vector<256x256xf32>, vector<48x256xf32> -> vector<48x256xf32>
    %c0_13 = arith.constant 0 : index
    %c0_14 = arith.constant 0 : index
    %18 = vector.load %arg5[%c0_13, %c0_14] : memref<1x256xf32, #tpu.memory_space<vmem>>, vector<1x256xf32>
    %19 = vector.broadcast %18 : vector<1x256xf32> to vector<48x256xf32>
    %20 = arith.addf %17, %19 : vector<48x256xf32>
    %cst_15 = arith.constant 0.000000e+00 : f32
    %21 = vector.broadcast %cst_15 : f32 to vector<48x256xf32>
    %22 = arith.cmpf ogt, %20, %21 : vector<48x256xf32>
    %cst_16 = arith.constant 2.000000e-01 : f32
    %23 = vector.broadcast %cst_16 : f32 to vector<48x256xf32>
    %24 = arith.mulf %23, %20 : vector<48x256xf32>
    %25 = arith.select %22, %20, %24 : vector<48x256xi1>, vector<48x256xf32>
    %c0_17 = arith.constant 0 : index
    %c0_18 = arith.constant 0 : index
    %26 = vector.load %arg6[%c0_17, %c0_18] : memref<1x256xf32, #tpu.memory_space<vmem>>, vector<1x256xf32>
    %27 = vector.broadcast %26 : vector<1x256xf32> to vector<48x256xf32>
    %28 = arith.mulf %25, %27 : vector<48x256xf32>
    %c0_19 = arith.constant 0 : index
    %c0_20 = arith.constant 0 : index
    %29 = vector.load %arg7[%c0_19, %c0_20] : memref<1x256xf32, #tpu.memory_space<vmem>>, vector<1x256xf32>
    %30 = vector.broadcast %29 : vector<1x256xf32> to vector<48x256xf32>
    %31 = arith.addf %28, %30 : vector<48x256xf32>
    %32 = vector.broadcast %2 : vector<48x1xf32> to vector<48x256xf32>
    %33 = arith.mulf %32, %31 : vector<48x256xf32>
    %c0_21 = arith.constant 0 : index
    %c0_22 = arith.constant 0 : index
    %34 = vector.load %arg8[%c0_21, %c0_22] : memref<256x64xf32, #tpu.memory_space<vmem>>, vector<256x64xf32>
    %cst_23 = arith.constant dense<0.000000e+00> : vector<48x64xf32>
    %35 = tpu.matmul %33, %34, %cst_23 {dimension_numbers = #tpu.dot_dimension_numbers<[1], [0], [0], [1], [0, 0, 1, 1], [], []>} : vector<48x256xf32>, vector<256x64xf32>, vector<48x64xf32> -> vector<48x64xf32>
    %c0_24 = arith.constant 0 : index
    %c0_25 = arith.constant 0 : index
    %36 = vector.load %arg9[%c0_24, %c0_25] : memref<1x64xf32, #tpu.memory_space<vmem>>, vector<1x64xf32>
    %37 = vector.broadcast %36 : vector<1x64xf32> to vector<48x64xf32>
    %38 = arith.addf %35, %37 : vector<48x64xf32>
    %cst_26 = arith.constant 0.000000e+00 : f32
    %39 = vector.broadcast %cst_26 : f32 to vector<48x64xf32>
    %40 = arith.cmpf ogt, %38, %39 : vector<48x64xf32>
    %cst_27 = arith.constant 2.000000e-01 : f32
    %41 = vector.broadcast %cst_27 : f32 to vector<48x64xf32>
    %42 = arith.mulf %41, %38 : vector<48x64xf32>
    %43 = arith.select %40, %38, %42 : vector<48x64xi1>, vector<48x64xf32>
    %c0_28 = arith.constant 0 : index
    %c0_29 = arith.constant 0 : index
    %44 = vector.load %arg10[%c0_28, %c0_29] : memref<64x8xf32, #tpu.memory_space<vmem>>, vector<64x8xf32>
    %cst_30 = arith.constant dense<0.000000e+00> : vector<48x8xf32>
    %45 = tpu.matmul %43, %44, %cst_30 {dimension_numbers = #tpu.dot_dimension_numbers<[1], [0], [0], [1], [0, 0, 1, 1], [], []>} : vector<48x64xf32>, vector<64x8xf32>, vector<48x8xf32> -> vector<48x8xf32>
    %c0_31 = arith.constant 0 : index
    %c0_32 = arith.constant 0 : index
    %46 = vector.load %arg11[%c0_31, %c0_32] : memref<1x8xf32, #tpu.memory_space<vmem>>, vector<1x8xf32>
    %47 = vector.broadcast %46 : vector<1x8xf32> to vector<48x8xf32>
    %48 = arith.addf %45, %47 : vector<48x8xf32>
    %cst_33 = arith.constant 0.000000e+00 : f32
    %49 = vector.broadcast %cst_33 : f32 to vector<48x8xf32>
    %50 = arith.cmpf ogt, %48, %49 : vector<48x8xf32>
    %cst_34 = arith.constant 2.000000e-01 : f32
    %51 = vector.broadcast %cst_34 : f32 to vector<48x8xf32>
    %52 = arith.mulf %51, %48 : vector<48x8xf32>
    %53 = arith.select %50, %48, %52 : vector<48x8xi1>, vector<48x8xf32>
    %c0_35 = arith.constant 0 : index
    %c0_36 = arith.constant 0 : index
    %54 = vector.load %arg12[%c0_35, %c0_36] : memref<1x8xf32, #tpu.memory_space<vmem>>, vector<1x8xf32>
    %55 = vector.broadcast %54 : vector<1x8xf32> to vector<48x8xf32>
    %56 = arith.mulf %53, %55 : vector<48x8xf32>
    %c0_37 = arith.constant 0 : index
    %c0_38 = arith.constant 0 : index
    %57 = vector.load %arg13[%c0_37, %c0_38] : memref<1x8xf32, #tpu.memory_space<vmem>>, vector<1x8xf32>
    %58 = vector.broadcast %57 : vector<1x8xf32> to vector<48x8xf32>
    %59 = arith.addf %56, %58 : vector<48x8xf32>
    %60 = vector.extract_strided_slice %59 {offsets = [0, 0], sizes = [6, 8], strides = [1, 1]} : vector<48x8xf32> to vector<6x8xf32>
    %61 = vector.extract_strided_slice %59 {offsets = [6, 0], sizes = [6, 8], strides = [1, 1]} : vector<48x8xf32> to vector<6x8xf32>
    %62 = vector.extract_strided_slice %59 {offsets = [12, 0], sizes = [6, 8], strides = [1, 1]} : vector<48x8xf32> to vector<6x8xf32>
    %63 = vector.extract_strided_slice %59 {offsets = [18, 0], sizes = [6, 8], strides = [1, 1]} : vector<48x8xf32> to vector<6x8xf32>
    %64 = vector.extract_strided_slice %59 {offsets = [24, 0], sizes = [6, 8], strides = [1, 1]} : vector<48x8xf32> to vector<6x8xf32>
    %65 = vector.extract_strided_slice %59 {offsets = [30, 0], sizes = [6, 8], strides = [1, 1]} : vector<48x8xf32> to vector<6x8xf32>
    %66 = vector.extract_strided_slice %59 {offsets = [36, 0], sizes = [6, 8], strides = [1, 1]} : vector<48x8xf32> to vector<6x8xf32>
    %67 = vector.extract_strided_slice %59 {offsets = [42, 0], sizes = [6, 8], strides = [1, 1]} : vector<48x8xf32> to vector<6x8xf32>
    %68 = tpu.concatenate %60, %61, %62, %63, %64, %65, %66, %67 in 1 : vector<6x8xf32>, vector<6x8xf32>, vector<6x8xf32>, vector<6x8xf32>, vector<6x8xf32>, vector<6x8xf32>, vector<6x8xf32>, vector<6x8xf32> -> vector<6x64xf32>
    %c0_39 = arith.constant 0 : index
    %c0_40 = arith.constant 0 : index
    %69 = vector.load %arg14[%c0_39, %c0_40] : memref<64x256xf32, #tpu.memory_space<vmem>>, vector<64x256xf32>
    %cst_41 = arith.constant dense<0.000000e+00> : vector<6x256xf32>
    %70 = tpu.matmul %68, %69, %cst_41 {dimension_numbers = #tpu.dot_dimension_numbers<[1], [0], [0], [1], [0, 0, 1, 1], [], []>} : vector<6x64xf32>, vector<64x256xf32>, vector<6x256xf32> -> vector<6x256xf32>
    %c0_42 = arith.constant 0 : index
    %c0_43 = arith.constant 0 : index
    %71 = vector.load %arg15[%c0_42, %c0_43] : memref<1x256xf32, #tpu.memory_space<vmem>>, vector<1x256xf32>
    %72 = vector.broadcast %71 : vector<1x256xf32> to vector<6x256xf32>
    %73 = arith.addf %70, %72 : vector<6x256xf32>
    %cst_44 = arith.constant 0.000000e+00 : f32
    %74 = vector.broadcast %cst_44 : f32 to vector<6x256xf32>
    %75 = arith.cmpf ogt, %73, %74 : vector<6x256xf32>
    %cst_45 = arith.constant 2.000000e-01 : f32
    %76 = vector.broadcast %cst_45 : f32 to vector<6x256xf32>
    %77 = arith.mulf %76, %73 : vector<6x256xf32>
    %78 = arith.select %75, %73, %77 : vector<6x256xi1>, vector<6x256xf32>
    %c0_46 = arith.constant 0 : index
    %c0_47 = arith.constant 0 : index
    %79 = vector.load %arg16[%c0_46, %c0_47] : memref<256x32xf32, #tpu.memory_space<vmem>>, vector<256x32xf32>
    %cst_48 = arith.constant dense<0.000000e+00> : vector<6x32xf32>
    %80 = tpu.matmul %78, %79, %cst_48 {dimension_numbers = #tpu.dot_dimension_numbers<[1], [0], [0], [1], [0, 0, 1, 1], [], []>} : vector<6x256xf32>, vector<256x32xf32>, vector<6x32xf32> -> vector<6x32xf32>
    %c0_49 = arith.constant 0 : index
    %c0_50 = arith.constant 0 : index
    %81 = vector.load %arg17[%c0_49, %c0_50] : memref<1x32xf32, #tpu.memory_space<vmem>>, vector<1x32xf32>
    %82 = vector.broadcast %81 : vector<1x32xf32> to vector<6x32xf32>
    %83 = arith.addf %80, %82 : vector<6x32xf32>
    %cst_51 = arith.constant 0.000000e+00 : f32
    %84 = vector.broadcast %cst_51 : f32 to vector<6x32xf32>
    %85 = arith.cmpf ogt, %83, %84 : vector<6x32xf32>
    %cst_52 = arith.constant 2.000000e-01 : f32
    %86 = vector.broadcast %cst_52 : f32 to vector<6x32xf32>
    %87 = arith.mulf %86, %83 : vector<6x32xf32>
    %88 = arith.select %85, %83, %87 : vector<6x32xi1>, vector<6x32xf32>
    %c0_53 = arith.constant 0 : index
    %c0_54 = arith.constant 0 : index
    %89 = vector.load %arg18[%c0_53, %c0_54] : memref<32x4xf32, #tpu.memory_space<vmem>>, vector<32x4xf32>
    %cst_55 = arith.constant dense<0.000000e+00> : vector<6x4xf32>
    %90 = tpu.matmul %88, %89, %cst_55 {dimension_numbers = #tpu.dot_dimension_numbers<[1], [0], [0], [1], [0, 0, 1, 1], [], []>} : vector<6x32xf32>, vector<32x4xf32>, vector<6x4xf32> -> vector<6x4xf32>
    %c0_56 = arith.constant 0 : index
    %c0_57 = arith.constant 0 : index
    %91 = vector.load %arg19[%c0_56, %c0_57] : memref<1x4xf32, #tpu.memory_space<vmem>>, vector<1x4xf32>
    %92 = vector.broadcast %91 : vector<1x4xf32> to vector<6x4xf32>
    %93 = arith.addf %90, %92 : vector<6x4xf32>
    %94 = vector.extract_strided_slice %93 {offsets = [0, 0], sizes = [2, 4], strides = [1, 1]} : vector<6x4xf32> to vector<2x4xf32>
    %95 = vector.extract_strided_slice %93 {offsets = [2, 0], sizes = [2, 4], strides = [1, 1]} : vector<6x4xf32> to vector<2x4xf32>
    %96 = vector.extract_strided_slice %93 {offsets = [4, 0], sizes = [2, 4], strides = [1, 1]} : vector<6x4xf32> to vector<2x4xf32>
    %97 = tpu.concatenate %94, %95, %96 in 1 : vector<2x4xf32>, vector<2x4xf32>, vector<2x4xf32> -> vector<2x12xf32>
    %c0_58 = arith.constant 0 : index
    %c0_59 = arith.constant 0 : index
    %98 = vector.load %arg20[%c0_58, %c0_59] : memref<12x6xf32, #tpu.memory_space<vmem>>, vector<12x6xf32>
    %cst_60 = arith.constant dense<0.000000e+00> : vector<2x6xf32>
    %99 = tpu.matmul %97, %98, %cst_60 {dimension_numbers = #tpu.dot_dimension_numbers<[1], [0], [0], [1], [0, 0, 1, 1], [], []>} : vector<2x12xf32>, vector<12x6xf32>, vector<2x6xf32> -> vector<2x6xf32>
    %c0_61 = arith.constant 0 : index
    %c0_62 = arith.constant 0 : index
    %100 = vector.load %arg21[%c0_61, %c0_62] : memref<1x6xf32, #tpu.memory_space<vmem>>, vector<1x6xf32>
    %101 = vector.broadcast %100 : vector<1x6xf32> to vector<2x6xf32>
    %102 = arith.addf %99, %101 : vector<2x6xf32>
    %cst_63 = arith.constant 5.000000e-01 : f32
    %103 = vector.broadcast %cst_63 : f32 to vector<2x6xf32>
    %104 = arith.mulf %103, %102 : vector<2x6xf32>
    %cst_64 = arith.constant 0.707106769 : f32
    %105 = vector.broadcast %cst_64 : f32 to vector<2x6xf32>
    %106 = arith.mulf %102, %105 : vector<2x6xf32>
    %107 = math.erf %106 : vector<2x6xf32>
    %cst_65 = arith.constant 1.000000e+00 : f32
    %108 = vector.broadcast %cst_65 : f32 to vector<2x6xf32>
    %109 = arith.addf %108, %107 : vector<2x6xf32>
    %110 = arith.mulf %104, %109 : vector<2x6xf32>
    %c0_66 = arith.constant 0 : index
    %c0_67 = arith.constant 0 : index
    %111 = vector.load %arg22[%c0_66, %c0_67] : memref<6x4xf32, #tpu.memory_space<vmem>>, vector<6x4xf32>
    %cst_68 = arith.constant dense<0.000000e+00> : vector<2x4xf32>
    %112 = tpu.matmul %110, %111, %cst_68 {dimension_numbers = #tpu.dot_dimension_numbers<[1], [0], [0], [1], [0, 0, 1, 1], [], []>} : vector<2x6xf32>, vector<6x4xf32>, vector<2x4xf32> -> vector<2x4xf32>
    %c0_69 = arith.constant 0 : index
    %c0_70 = arith.constant 0 : index
    %113 = vector.load %arg23[%c0_69, %c0_70] : memref<1x4xf32, #tpu.memory_space<vmem>>, vector<1x4xf32>
    %114 = vector.broadcast %113 : vector<1x4xf32> to vector<2x4xf32>
    %115 = arith.addf %112, %114 : vector<2x4xf32>
    %c0_71 = arith.constant 0 : index
    %c0_72 = arith.constant 0 : index
    %116 = vector.load %arg24[%c0_71, %c0_72] : memref<2x4xf32, #tpu.memory_space<vmem>>, vector<2x4xf32>
    tpu.vector_store %arg24[%c0_71, %c0_72], %115 {strides = array<i32>} : memref<2x4xf32, #tpu.memory_space<vmem>>, vector<2x4xf32>,
    return
  }
}

</mosaic_0001>

<bundles_post_ra>
// kernel: mlcgcn_forward.2
= control target key start
LH: loop header
LB: loop body
LE: loop exit
PB: predicated region body
PF: predicated region fallthrough
CT: control target
= control target key end

     0   :  { %s1046_s13 = smov 0   ;;  %s1145_s0 = inlined_call_operand.vmem [shape: f32[2,8,18], index: 0, kind: input, shape index: {}]   ;;  %s1146_s1 = inlined_call_operand.vmem [shape: f32[2,8,8], index: 1, kind: input, shape index: {}]   ;;  %s1147_s2 = inlined_call_operand.vmem [shape: f32[18,64], index: 2, kind: input, shape index: {}]   ;;  %s1148_s3 = inlined_call_operand.vmem [shape: f32[1,64], index: 3, kind: input, shape index: {}]   ;;  %s1149_s4 = inlined_call_operand.vmem [shape: f32[64,16], index: 4, kind: input, shape index: {}]   ;;  %s1150_s5 = inlined_call_operand.vmem [shape: f32[1,16], index: 5, kind: input, shape index: {}]   ;;  %s1151_s6 = inlined_call_operand.vmem [shape: f32[8,16], index: 6, kind: input, shape index: {}]   ;;  %s1152_s7 = inlined_call_operand.vmem [shape: f32[16,16], index: 7, kind: input, shape index: {}]   ;;  %s1153_s8 = inlined_call_operand.vmem [shape: f32[1,16], index: 8, kind: input, shape index: {}]   ;;  %s1154_s9 = inlined_call_operand.vmem [shape: f32[2,8,8], index: 9, kind: output, shape index: {0}]   ;;  %s1155_s10 = inlined_call_operand.vmem [shape: f32[2,8,8], index: 10, kind: output, shape index: {1}]  }
   0x1 LB: > { %s863_s14 = sadd.s32 4294967295, %s986_s13   ;;  %p867_p0 = scmp.ge.s32.totalorder %s986_s13, 1  ;;  %s986_s13 = sphi %s1046_s13, %s21_s13  }
   0x2   : > { %p323_p1 = scmp.lt.s32.totalorder %s986_s13, 3 }
   0x4   : > { %p324_p2 = pnand %p867_p0, %p323_p1 }
   0x5   : > { %v410_v0 = vld [vmem:[%s1147_s2] sm:$0xff] (!%p324_p2)  ;;  %v411_v1 = vld [vmem:[%s1147_s2 + $0x8] sm:$0xff] (!%p324_p2)  ;;  %v988_v2 = vmov (!%p324_p2), 0.0|0.0   ;;  %p367_p3 = scmp.lt.s32.totalorder (!%p324_p2), %s863_s14, 1  ;;  %vm989_vm0 = vmmov (!%p324_p2), 0   ;;  %v990_v4 = vmov (!%p324_p2), 0.0  }
   0x6   : > { %327 = sbr.rel (%p324_p2) target bundleno = 1225 (0x4c9), region = 56  ;;  %941 = vmatprep.subr.bf16.mxu0 (!%p324_p2), %v988_v2  ;;  %v942_v3 = vpack.c.bf16 (!%p324_p2), %v411_v1, %v410_v0  ;;  %944 = vmatprep.subr.bf16.mxu1 (!%p324_p2), %v988_v2  ;;  %v412_v5 = vld [vmem:[%s1147_s2 + $0x10] sm:$0x3] (!%p324_p2)  ;;  %vm424_vm1 = vcmask (!%p324_p2), 1041408   ;;  %vm420_vm2 = vcmask (!%p324_p2), 146432   ;;  %v503_v7 = vld [vmem:[%s1149_s4] sm:$0xff] (!%p324_p2) }
   0x7   : > { %907 = vmatprep.mubr.msk.f32.mxu0 (!%p324_p2), %vm989_vm0, %v990_v4  ;;  %926 = vmatprep.mubr.msk.f32.mxu1 (!%p324_p2), %vm989_vm0, %v990_v4  ;;  %v504_v8 = vld [vmem:[%s1149_s4 + $0x8] sm:$0xff] (!%p324_p2)  ;;  %v505_v10 = vld [vmem:[%s1149_s4 + $0x10] sm:$0xff] (!%p324_p2)  ;;  %v506_v11 = vld [vmem:[%s1149_s4 + $0x18] sm:$0xff] (!%p324_p2)  ;;  %vm518_vm3 = vcmask (!%p324_p2), 523264   ;;  %vm608_vm4 = vcmask (!%p324_p2), 130048   ;;  %vm384_vm5 = vcmask (!%p324_p2), 64512  }
   0x8   : > { %943 = vmatpush3.bf16.msra.mxu0 (!%p324_p2), %v942_v3  ;;  %v945_v9 = vpack.c.bf16 (!%p324_p2), %v504_v8, %v503_v7  ;;  %v948_v12 = vpack.c.bf16 (!%p324_p2), %v506_v11, %v505_v10  ;;  %v507_v13 = vld [vmem:[%s1149_s4 + $0x20] sm:$0xff] (!%p324_p2)  ;;  %v508_v14 = vld [vmem:[%s1149_s4 + $0x28] sm:$0xff] (!%p324_p2)  ;;  %v509_v16 = vld [vmem:[%s1149_s4 + $0x30] sm:$0xff] (!%p324_p2) }
   0x9   : > { %905 = vmatprep.subr.mxu0 (!%p324_p2), %v990_v4  ;;  %v951_v15 = vpack.c.bf16 (!%p324_p2), %v508_v14, %v507_v13  ;;  %v510_v17 = vld [vmem:[%s1149_s4 + $0x38] sm:$0xff] (!%p324_p2)  ;;  %v872_v19 = vld [vmem:[%s1148_s3] ss:$0 sm:$0xff] (!%p324_p2)  ;;  %v600_v29 = vld [vmem:[%s1152_s7 + $0x8] sm:$0xff] (!%p324_p2) }
   0xa   : > { %946 = vmatpush3.bf16.msra.mxu1 (!%p324_p2), %v945_v9  ;;  %v954_v18 = vpack.c.bf16 (!%p324_p2), %v510_v17, %v509_v16  ;;  %v599_v28 = vld [vmem:[%s1152_s7] sm:$0xff] (!%p324_p2) }
   0xb   : > { %947 = vmatprep.subr.bf16.mxu1 (!%p324_p2), %v988_v2  ;;  %v957_v30 = vpack.c.bf16 (!%p324_p2), %v600_v29, %v599_v28  ;;  %v875_v31 = vld [vmem:[%s1150_s5] ss:$0 sm:$0xff] (!%p324_p2) }
   0xc   : > { %906 = vmatpush3.msk.msra.mxu0 (!%p324_p2), %vm424_vm1, %v412_v5  ;;  %v597_v39 = vld [vmem:[%s1151_s6] sm:$0xff] (!%p324_p2) }
   0xd   : > { %s1157_s14 = smov (!%p367_p3, %s863_s14), 1  ;;  %956 = vmatprep.subr.bf16.mxu0 %v988_v2  ;;  %v877_v42 = vld [vmem:[%s1153_s8] ss:$0 sm:$0xff] }
   0xe   : > { %s1068_s21 = sshll.u32 %s1157_s14, 3  ;;  %949 = vmatpush3.bf16.msra.mxu1 %v948_v12 }
   0xf   : > { %s370_s24 = scalar_lea.vmem %s1145_s0, %s1068_s21  ;;  %950 = vmatprep.subr.bf16.mxu1 %v988_v2  ;;  %s374_s18 = scalar_lea.vmem %s1146_s1, %s1068_s21 }
  0x10   : > { %v409_v6 = vld [vmem:[%s370_s24] sm:$0xff]  ;;  %s378_s22 = scalar_lea.vmem %s1154_s9, %s1068_s21  ;;  %s382_s25 = scalar_lea.vmem %s1155_s10, %s1068_s21 }
  0x11   : > { %908 = vmatmul.mubr.msk.f32.vlgmr.msra.gmra.mrb[0].mxu0 %vm420_vm2, %v409_v6  ;;  %v383_v52 = vld [vmem:[%s374_s18] sm:$0xff] }
  0x12   : > { %933 = vmatprep.mubr.msk.f32.mxu0 %vm989_vm0, %v990_v4  ;;  %952 = vmatpush3.bf16.msra.mxu1 %v951_v15  ;;  %v385_v53 = vsel %vm384_vm5, %v383_v52, inf  ;;  %v394_v54 = vsel %vm384_vm5, %v383_v52, -inf }
  0x13   : > { %953 = vmatprep.subr.bf16.mxu1 %v988_v2  ;;  %958 = vmatpush3.bf16.msra.mxu0 %v957_v30 }
  0x14   : > { %936 = vmatprep.subr.mxu0 %v990_v4  ;;  %386 = vmin.xlane.f32.xlu1 %v385_v53 }
  0x16   : > { %955 = vmatpush3.bf16.msra.mxu1 %v954_v18 }
  0x18   : > { %395 = vmax.xlane.f32.xlu1 %v394_v54 }
  0xa1   : > { %v387_v58 = vpop.xlane.xlu1 %386 }
  0xa2   : > { %v388_v59 = vrot.slane %v387_v58, 4 }
  0xa4   : > { %v389_v60 = vmin.f32 %v387_v58, %v388_v59 }
  0xa5   : > { %v396_v61 = vpop.xlane.xlu1 %395 }
  0xa6   : > { %v390_v62 = vrot.slane %v389_v60, 2  ;;  %v397_v63 = vrot.slane %v396_v61, 4 }
  0xa8   : > { %v391_v0 = vmin.f32 %v389_v60, %v390_v62  ;;  %v398_v1 = vmax.f32 %v396_v61, %v397_v63 }
  0xaa   : > { %v392_v2 = vrot.slane %v391_v0, 1  ;;  %v399_v3 = vrot.slane %v398_v1, 2 }
  0xac   : > { %v393_v5 = vmin.f32 %v391_v0, %v392_v2 }
  0xae   : > { %v406_v10 = vsub.f32 %v383_v52, %v393_v5 }
  0xe4   : > { %v494_v20 = vpop.f32.mrb[0].mxu0 }
  0xe5   : > { %v495_v21 = vadd.f32 %v872_v19, %v494_v20  ;;  %v909_v22 = vpop.f32.mrb[1].mxu0 }
  0xe7   : > { %v499_v23 = vmul.f32 0.70710677, %v495_v21  ;;  %v498_v25 = vmul.f32 0.5, %v495_v21 }
  0xe9   : > { %970 = verf.f32 %v499_v23 }
  0xf3   : > { %v971_v24 = vpop.eup %970 }
  0xf4   : > { %v501_v26 = vadd.f32 1.0, %v971_v24 }
  0xf6   : > { %v502_v27 = vmul.f32 %v501_v26, %v498_v25 }
  0xf8   : > { %927 = vmatmul.mubr.msk.f32.vlgmr.msra.gmra.mrb[0].mxu1 %vm518_vm3, %v502_v27 }
 0x1cb   : > { %v588_v32 = vpop.f32.mrb[0].mxu1 }
 0x1cc   : > { %v589_v33 = vadd.f32 %v875_v31, %v588_v32  ;;  %v928_v34 = vpop.f32.mrb[1].mxu1 }
 0x1ce   : > { %v593_v35 = vmul.f32 0.70710677, %v589_v33  ;;  %v592_v37 = vmul.f32 0.5, %v589_v33 }
 0x1d0   : > { %972 = verf.f32 %v593_v35 }
 0x1da   : > { %v973_v36 = vpop.eup %972 }
 0x1db   : > { %v595_v38 = vadd.f32 1.0, %v973_v36 }
 0x1dd   : > { %v596_v40 = vmul.f32 %v595_v38, %v592_v37 }
 0x1df   : > { %v598_v41 = vadd.f32 %v597_v39, %v596_v40 }
 0x1e1   : > { %934 = vmatmul.mubr.msk.f32.vlgmr.msra.gmra.mrb[2].mxu0 %vm608_vm4, %v598_v41 }
 0x1e2   : > { %938 = vmatprep.mubr.msk.f32.mxu0 %vm989_vm0, %v990_v4  ;;  %v400_v4 = vmax.f32 %v398_v1, %v399_v3 }
 0x1e4   : > { %v401_v6 = vrot.slane %v400_v4, 1 }
 0x1e6   : > { %v402_v7 = vmax.f32 %v400_v4, %v401_v6 }
 0x1e8   : > { %v403_v8 = vsub.f32 %v402_v7, %v393_v5 }
 0x1ea   : > { %v404_v9 = vadd.f32 1e-06, %v403_v8 }
 0x2b4   : > { %v678_v43 = vpop.f32.mrb[2].mxu0 }
 0x2b5   : > { %v679_v44 = vadd.f32 %v877_v42, %v678_v43  ;;  %v935_v45 = vpop.f32.mrb[3].mxu0 }
 0x2b7   : > { %v682_v46 = vsel %vm608_vm4, %v679_v44, -inf }
 0x2b8   : > { %683 = vmax.xlane.f32.xlu0 %v682_v46 }
 0x345   : > { %v684_v47 = vpop.xlane.xlu0 %683 }
 0x346   : > { %v685_v48 = vsub.f32 %v679_v44, %v684_v47 }
 0x348   : > { %v686_v49 = vmul.f32 1.442695, %v685_v48 }
 0x34a   : > { %974 = vpow2.f32 %v686_v49 }
 0x354   : > { %v975_v50 = vpop.eup %974 }
 0x355   : > { %v688_v51 = vsel %vm608_vm4, %v975_v50, 0.0 }
 0x356   : > { %689 = vadd.xlane.f32.xlu0 %v688_v51 }
 0x3e3   : > { %v690_v55 = vpop.xlane.xlu0 %689 }
 0x3e4   : > { %976 = vrcp.f32 %v690_v55 }
 0x3e5   : > { %978 = vrcp.f32 %v404_v9 }
 0x3ee   : > { %v977_v56 = vpop.eup %976 }
 0x3ef   : > { %v692_v57 = vmul.f32 %v977_v56, %v975_v50  ;;  %v979_v11 = vpop.eup %978 }
 0x3f0   : > { %v407_v12 = vmul.f32 %v979_v11, %v406_v10 }
 0x3f1   : > { %937 = vmatpush3.xpose.msk.msra.mxu0 %vm608_vm4, %v692_v57 }
 0x3f2   : > { %408 = vst.msk [vmem:[%s378_s22] sm:$0xff] %vm384_vm5, %v407_v12 }
 0x3f4   : > { %939 = vmatmul.mubr.msk.f32.vlgmr.msra.gmra.mrb[4].mxu0 %vm608_vm4, %v692_v57 }
 0x4c7   : > { %v762_v13 = vpop.f32.mrb[4].mxu0 }
 0x4c8   : > { %766 = vst.msk [vmem:[%s382_s25] sm:$0xff] %vm384_vm5, %v762_v13  ;;  %v940_v14 = vpop.f32.mrb[5].mxu0 }
 0x4c9 PF: > { %s21_s13 = sadd.s32 1, %s986_s13  }
 0x4ca   : > { %p18_p4 = scmp.ge.s32.totalorder %s21_s13, 4  }
 0x4cc   :  { %20 = sbr.rel (!%p18_p4) target bundleno = 1 (0x1), region = 101 }

// kernel: mlcgcn_forward.3
= control target key start
LH: loop header
LB: loop body
LE: loop exit
PB: predicated region body
PF: predicated region fallthrough
CT: control target
= control target key end

     0   :  { %s2711_s0 = inlined_call_operand.vmem [shape: f32[48,8], index: 0, kind: input, shape index: {}]   ;;  %s2712_s1 = inlined_call_operand.vmem [shape: f32[48,8], index: 1, kind: input, shape index: {}]   ;;  %s2713_s2 = inlined_call_operand.vmem [shape: f32[8,256], index: 2, kind: input, shape index: {}]   ;;  %s2714_s3 = inlined_call_operand.vmem [shape: f32[1,256], index: 3, kind: input, shape index: {}]   ;;  %s2715_s4 = inlined_call_operand.vmem [shape: f32[256,256], index: 4, kind: input, shape index: {}]   ;;  %s2716_s5 = inlined_call_operand.vmem [shape: f32[1,256], index: 5, kind: input, shape index: {}]   ;;  %s2717_s6 = inlined_call_operand.vmem [shape: f32[1,256], index: 6, kind: input, shape index: {}]   ;;  %s2718_s7 = inlined_call_operand.vmem [shape: f32[1,256], index: 7, kind: input, shape index: {}]   ;;  %s2719_s8 = inlined_call_operand.vmem [shape: f32[256,64], index: 8, kind: input, shape index: {}]   ;;  %s2720_s9 = inlined_call_operand.vmem [shape: f32[1,64], index: 9, kind: input, shape index: {}]   ;;  %s2721_s10 = inlined_call_operand.vmem [shape: f32[64,8], index: 10, kind: input, shape index: {}]   ;;  %s2722_s11 = inlined_call_operand.vmem [shape: f32[1,8], index: 11, kind: input, shape index: {}]   ;;  %s2723_s12 = inlined_call_operand.vmem [shape: f32[1,8], index: 12, kind: input, shape index: {}]   ;;  %s2724_s13 = inlined_call_operand.vmem [shape: f32[1,8], index: 13, kind: input, shape index: {}]   ;;  %s2725_s14 = inlined_call_operand.vmem [shape: f32[64,256], index: 14, kind: input, shape index: {}]   ;;  %s2726_s15 = inlined_call_operand.vmem [shape: f32[1,256], index: 15, kind: input, shape index: {}]   ;;  %s2727_s16 = inlined_call_operand.vmem [shape: f32[256,32], index: 16, kind: input, shape index: {}]   ;;  %s2728_s17 = inlined_call_operand.vmem [shape: f32[1,32], index: 17, kind: input, shape index: {}]   ;;  %s2729_s18 = inlined_call_operand.vmem [shape: f32[32,4], index: 18, kind: input, shape index: {}]   ;;  %s2730_s19 = inlined_call_operand.vmem [shape: f32[1,4], index: 19, kind: input, shape index: {}]   ;;  %s2731_s20 = inlined_call_operand.vmem [shape: f32[12,6], index: 20, kind: input, shape index: {}]   ;;  %s2732_s21 = inlined_call_operand.vmem [shape: f32[1,6], index: 21, kind: input, shape index: {}]   ;;  %s2733_s22 = inlined_call_operand.vmem [shape: f32[6,4], index: 22, kind: input, shape index: {}]   ;;  %s2734_s23 = inlined_call_operand.vmem [shape: f32[1,4], index: 23, kind: input, shape index: {}]   ;;  %s2735_s24 = inlined_call_operand.hbm [shape: f32[2,4], index: 24, kind: output, shape index: {}]  }
   0x1   :  { %2741 = sst [smem:[#allocation5_spill]] %s2711_s0 }
   0x2   :  { %2742 = sst [smem:[#allocation6_spill]] %s2712_s1 }
   0x3   :  { %2743 = sst [smem:[#allocation7_spill]] %s2713_s2 }
   0x4   :  { %2744 = sst [smem:[#allocation8_spill]] %s2714_s3 }
   0x5   :  { %2745 = sst [smem:[#allocation9_spill]] %s2715_s4 }
   0x6   :  { %2746 = sst [smem:[#allocation10_spill]] %s2716_s5 }
   0x7   :  { %2747 = sst [smem:[#allocation11_spill]] %s2717_s6 }
   0x8   :  { %2748 = sst [smem:[#allocation12_spill]] %s2718_s7 }
   0x9   :  { %2749 = sst [smem:[#allocation13_spill]] %s2719_s8 }
   0xa   :  { %s2750_s27 = sld [smem:[#allocation5_spill]]  ;;  %vm84_vm0 = vcmask 64512  }
  0x10   :  { %v78_v0 = vld [vmem:[%s2750_s27] sm:$0xff]  ;;  %v79_v1 = vld [vmem:[%s2750_s27 + $0x8] sm:$0xff]  ;;  %v80_v2 = vld [vmem:[%s2750_s27 + $0x10] sm:$0xff] }
  0x11   :  { %v85_v3 = vsel %vm84_vm0, %v78_v0, 0.0  ;;  %v91_v4 = vsel %vm84_vm0, %v80_v2, 0.0  ;;  %v81_v5 = vld [vmem:[%s2750_s27 + $0x18] sm:$0xff] }
  0x12   :  { %86 = vadd.xlane.f32.xlu0 %v85_v3  ;;  %92 = vadd.xlane.f32.xlu1 %v91_v4 }
  0x13   :  { %29 = vsyncpa [#allocation3], 0  ;;  %v88_v6 = vsel %vm84_vm0, %v79_v1, 0.0  ;;  %v94_v7 = vsel %vm84_vm0, %v81_v5, 0.0  ;;  %v82_v8 = vld [vmem:[%s2750_s27 + $0x20] sm:$0xff]  ;;  %v83_v9 = vld [vmem:[%s2750_s27 + $0x28] sm:$0xff] }
  0x14   :  { %v97_v10 = vsel %vm84_vm0, %v82_v8, 0.0  ;;  %v100_v11 = vsel %vm84_vm0, %v83_v9, 0.0  ;;  %s2751_s5 = sld [smem:[#allocation7_spill]]  ;;  %v1839_v14 = vmov 0.0   ;;  %s2752_s2 = sld [smem:[#allocation9_spill]] }
  0x15   :  { %211 = vmatprep.mubr.f32.mxu0 %v1839_v14  ;;  %s2753_s29 = sld [smem:[#allocation6_spill]]  ;;  %s2755_s6 = sld [smem:[#allocation8_spill]] }
  0x16   :  { %89 = vadd.xlane.f32.xlu0 %v88_v6  ;;  %95 = vadd.xlane.f32.xlu1 %v94_v7  ;;  %s2756_s30 = sld [smem:[#allocation10_spill]]  ;;  %s2757_s25 = sld [smem:[#allocation11_spill]] }
  0x17   :  { %s1841_s4 = smov 32   ;;  %s1845_s0 = smov 40  }
  0x1a   :  { %98 = vadd.xlane.f32.xlu0 %v97_v10  ;;  %101 = vadd.xlane.f32.xlu1 %v100_v11  ;;  %v116_v12 = vld [vmem:[%s2751_s5 + $0x8] sm:$0xff]  ;;  %v115_v13 = vld [vmem:[%s2751_s5] sm:$0xff]  ;;  %v287_v16 = vld [vmem:[%s2752_s2 + $0x18] sm:$0xff] }
  0x1b   :  { %147 = vmatprep.subr.mxu0 %v116_v12  ;;  %v285_v15 = vld [vmem:[%s2752_s2 + $0x8] sm:$0xff]  ;;  %v284_v17 = vld [vmem:[%s2752_s2] sm:$0xff]  ;;  %v286_v19 = vld [vmem:[%s2752_s2 + $0x10] sm:$0xff] }
  0x1c   :  { %148 = vmatpush1.msra.mxu0 %v115_v13  ;;  %v1630_v18 = vpack.c.bf16 %v287_v16, %v285_v15  ;;  %v289_v20 = vld [vmem:[%s2752_s2 + $0x28] sm:$0xff]  ;;  %v291_v21 = vld [vmem:[%s2752_s2 + $0x38] sm:$0xff]  ;;  %v1632_v22 = vpack.c.bf16 %v286_v19, %v284_v17  ;;  %v288_v24 = vld [vmem:[%s2752_s2 + $0x20] sm:$0xff] }
  0x1d   :  { %v1634_v23 = vpack.c.bf16 %v291_v21, %v289_v20  ;;  %v290_v25 = vld [vmem:[%s2752_s2 + $0x30] sm:$0xff]  ;;  %v293_v26 = vld [vmem:[%s2752_s2 + $0x48] sm:$0xff]  ;;  %v295_v27 = vld [vmem:[%s2752_s2 + $0x58] sm:$0xff] }
  0x1e   :  { %1631 = vmatprep.subr.bf16.mxu1 %v1630_v18  ;;  %v1636_v28 = vpack.c.bf16 %v290_v25, %v288_v24  ;;  %v1638_v29 = vpack.c.bf16 %v295_v27, %v293_v26  ;;  %v292_v30 = vld [vmem:[%s2752_s2 + $0x40] sm:$0xff]  ;;  %v294_v31 = vld [vmem:[%s2752_s2 + $0x50] sm:$0xff]  ;;  %v297_v32 = vld [vmem:[%s2752_s2 + $0x68] sm:$0xff] }
  0x1f   :  { %1633 = vmatpush1.bf16.msra.mxu1 %v1632_v22  ;;  %v299_v33 = vld [vmem:[%s2752_s2 + $0x78] sm:$0xff]  ;;  %v1640_v34 = vpack.c.bf16 %v294_v31, %v292_v30  ;;  %v296_v36 = vld [vmem:[%s2752_s2 + $0x60] sm:$0xff]  ;;  %v298_v37 = vld [vmem:[%s2752_s2 + $0x70] sm:$0xff] }
  0x20   :  { %1635 = vmatprep.subr.bf16.mxu1 %v1634_v23  ;;  %v1642_v35 = vpack.c.bf16 %v299_v33, %v297_v32  ;;  %v301_v38 = vld [vmem:[%s2752_s2 + $0x88] sm:$0xff]  ;;  %v303_v39 = vld [vmem:[%s2752_s2 + $0x98] sm:$0xff]  ;;  %v1644_v40 = vpack.c.bf16 %v298_v37, %v296_v36  ;;  %v300_v42 = vld [vmem:[%s2752_s2 + $0x80] sm:$0xff] }
  0x21   :  { %v1646_v41 = vpack.c.bf16 %v303_v39, %v301_v38  ;;  %v302_v43 = vld [vmem:[%s2752_s2 + $0x90] sm:$0xff]  ;;  %v305_v44 = vld [vmem:[%s2752_s2 + $0xa8] sm:$0xff]  ;;  %v307_v45 = vld [vmem:[%s2752_s2 + $0xb8] sm:$0xff] }
  0x22   :  { %v1648_v46 = vpack.c.bf16 %v302_v43, %v300_v42  ;;  %v1650_v47 = vpack.c.bf16 %v307_v45, %v305_v44  ;;  %v304_v48 = vld [vmem:[%s2752_s2 + $0xa0] sm:$0xff]  ;;  %v306_v49 = vld [vmem:[%s2752_s2 + $0xb0] sm:$0xff]  ;;  %v309_v50 = vld [vmem:[%s2752_s2 + $0xc8] sm:$0xff] }
  0x23   :  { %1637 = vmatpush1.bf16.msra.mxu1 %v1636_v28  ;;  %v311_v51 = vld [vmem:[%s2752_s2 + $0xd8] sm:$0xff]  ;;  %v1652_v52 = vpack.c.bf16 %v306_v49, %v304_v48  ;;  %v308_v54 = vld [vmem:[%s2752_s2 + $0xc0] sm:$0xff]  ;;  %v310_v55 = vld [vmem:[%s2752_s2 + $0xd0] sm:$0xff] }
  0x24   :  { %1639 = vmatprep.subr.bf16.mxu1 %v1638_v29  ;;  %v1654_v53 = vpack.c.bf16 %v311_v51, %v309_v50  ;;  %v313_v56 = vld [vmem:[%s2752_s2 + $0xe8] sm:$0xff]  ;;  %v315_v57 = vld [vmem:[%s2752_s2 + $0xf8] sm:$0xff]  ;;  %v1656_v58 = vpack.c.bf16 %v310_v55, %v308_v54  ;;  %v312_v60 = vld [vmem:[%s2752_s2 + $0xe0] sm:$0xff] }
  0x25   :  { %v1658_v59 = vpack.c.bf16 %v315_v57, %v313_v56  ;;  %v314_v61 = vld [vmem:[%s2752_s2 + $0xf0] sm:$0xff]  ;;  %v317_v62 = vld [vmem:[%s2752_s2 + $0x108] sm:$0xff]  ;;  %v319_v63 = vld [vmem:[%s2752_s2 + $0x118] sm:$0xff] }
  0x26   :  { %v1660_v0 = vpack.c.bf16 %v314_v61, %v312_v60  ;;  %v1662_v1 = vpack.c.bf16 %v319_v63, %v317_v62  ;;  %v316_v2 = vld [vmem:[%s2752_s2 + $0x100] sm:$0xff]  ;;  %v318_v3 = vld [vmem:[%s2752_s2 + $0x110] sm:$0xff]  ;;  %v321_v4 = vld [vmem:[%s2752_s2 + $0x128] sm:$0xff] }
  0x27   :  { %1641 = vmatpush1.bf16.msra.mxu1 %v1640_v34  ;;  %v323_v5 = vld [vmem:[%s2752_s2 + $0x138] sm:$0xff]  ;;  %v1664_v6 = vpack.c.bf16 %v318_v3, %v316_v2  ;;  %v320_v8 = vld [vmem:[%s2752_s2 + $0x120] sm:$0xff]  ;;  %v322_v9 = vld [vmem:[%s2752_s2 + $0x130] sm:$0xff] }
  0x28   :  { %1643 = vmatprep.subr.bf16.mxu1 %v1642_v35  ;;  %v1666_v7 = vpack.c.bf16 %v323_v5, %v321_v4  ;;  %v325_v10 = vld [vmem:[%s2752_s2 + $0x148] sm:$0xff]  ;;  %v327_v11 = vld [vmem:[%s2752_s2 + $0x158] sm:$0xff]  ;;  %v1668_v12 = vpack.c.bf16 %v322_v9, %v320_v8  ;;  %v324_v15 = vld [vmem:[%s2752_s2 + $0x140] sm:$0xff] }
  0x29   :  { %v1670_v13 = vpack.c.bf16 %v327_v11, %v325_v10  ;;  %v326_v16 = vld [vmem:[%s2752_s2 + $0x150] sm:$0xff]  ;;  %v329_v17 = vld [vmem:[%s2752_s2 + $0x168] sm:$0xff]  ;;  %v331_v18 = vld [vmem:[%s2752_s2 + $0x178] sm:$0xff] }
  0x2a   :  { %v1672_v19 = vpack.c.bf16 %v326_v16, %v324_v15  ;;  %v1674_v20 = vpack.c.bf16 %v331_v18, %v329_v17  ;;  %v328_v21 = vld [vmem:[%s2752_s2 + $0x160] sm:$0xff]  ;;  %v330_v22 = vld [vmem:[%s2752_s2 + $0x170] sm:$0xff]  ;;  %v333_v23 = vld [vmem:[%s2752_s2 + $0x188] sm:$0xff] }
  0x2b   :  { %1645 = vmatpush1.bf16.msra.mxu1 %v1644_v40  ;;  %v335_v24 = vld [vmem:[%s2752_s2 + $0x198] sm:$0xff]  ;;  %v1676_v25 = vpack.c.bf16 %v330_v22, %v328_v21  ;;  %v332_v27 = vld [vmem:[%s2752_s2 + $0x180] sm:$0xff]  ;;  %v334_v28 = vld [vmem:[%s2752_s2 + $0x190] sm:$0xff] }
  0x2c   :  { %1647 = vmatprep.subr.bf16.mxu1 %v1646_v41  ;;  %v1678_v26 = vpack.c.bf16 %v335_v24, %v333_v23  ;;  %v337_v29 = vld [vmem:[%s2752_s2 + $0x1a8] sm:$0xff]  ;;  %v339_v30 = vld [vmem:[%s2752_s2 + $0x1b8] sm:$0xff]  ;;  %v1680_v31 = vpack.c.bf16 %v334_v28, %v332_v27  ;;  %v336_v33 = vld [vmem:[%s2752_s2 + $0x1a0] sm:$0xff] }
  0x2d   :  { %v1682_v32 = vpack.c.bf16 %v339_v30, %v337_v29  ;;  %v338_v34 = vld [vmem:[%s2752_s2 + $0x1b0] sm:$0xff]  ;;  %v103_v36 = vld [vmem:[%s2753_s29] sm:$0xff]  ;;  %v104_v39 = vld [vmem:[%s2753_s29 + $0x8] sm:$0xff] }
  0x2e   :  { %v1684_v35 = vpack.c.bf16 %v338_v34, %v336_v33  ;;  %v105_v42 = vld [vmem:[%s2753_s29 + $0x10] sm:$0xff]  ;;  %v106_v45 = vld [vmem:[%s2753_s29 + $0x18] sm:$0xff]  ;;  %v107_v48 = vld [vmem:[%s2753_s29 + $0x20] sm:$0xff]  ;;  %v119_v33 = vlaneseq }
  0x2f   :  { %1649 = vmatpush1.bf16.msra.mxu1 %v1648_v46  ;;  %v108_v51 = vld [vmem:[%s2753_s29 + $0x28] sm:$0xff]  ;;  %v343_v55 = vld [vmem:[%s2752_s2 + $0x1d8] sm:$0xff]  ;;  %v340_v57 = vld [vmem:[%s2752_s2 + $0x1c0] sm:$0xff]  ;;  %s2754_s29 = sld [smem:[#allocation13_spill]] }
  0x30   :  { %1651 = vmatprep.subr.bf16.mxu1 %v1650_v47  ;;  %v341_v54 = vld [vmem:[%s2752_s2 + $0x1c8] sm:$0xff]  ;;  %v347_v61 = vld [vmem:[%s2752_s2 + $0x1f8] sm:$0xff]  ;;  %v344_v63 = vld [vmem:[%s2752_s2 + $0x1e0] sm:$0xff]  ;;  %v120_v34 = vshrl.u32 %v119_v33, 7 }
  0x31   :  { %v1686_v56 = vpack.c.bf16 %v343_v55, %v341_v54  ;;  %v345_v60 = vld [vmem:[%s2752_s2 + $0x1e8] sm:$0xff] }
  0x32   :  { %v1690_v62 = vpack.c.bf16 %v347_v61, %v345_v60 }
  0x33   :  { %1653 = vmatpush1.bf16.msra.mxu1 %v1652_v52 }
  0x34   :  { %1655 = vmatprep.subr.bf16.mxu1 %v1654_v53 }
  0x35   :  { %v573_v2 = vld [vmem:[%s2754_s29 + $0x80] sm:$0xff]  ;;  %v574_v3 = vld [vmem:[%s2754_s29 + $0x88] sm:$0xff]  ;;  %v576_v8 = vld [vmem:[%s2754_s29 + $0x98] sm:$0xff] }
  0x36   :  { %v557_v4 = vld [vmem:[%s2754_s29] sm:$0xff]  ;;  %v1694_v5 = vpack.c.bf16 %v574_v3, %v573_v2  ;;  %v559_v11 = vld [vmem:[%s2754_s29 + $0x10] sm:$0xff]  ;;  %v578_v15 = vld [vmem:[%s2754_s29 + $0xa8] sm:$0xff] }
  0x37   :  { %1657 = vmatpush1.bf16.msra.mxu1 %v1656_v58  ;;  %v342_v58 = vld [vmem:[%s2752_s2 + $0x1d0] sm:$0xff]  ;;  %v561_v18 = vld [vmem:[%s2754_s29 + $0x20] sm:$0xff]  ;;  %v580_v21 = vld [vmem:[%s2754_s29 + $0xb8] sm:$0xff] }
  0x38   :  { %1659 = vmatprep.subr.bf16.mxu1 %v1658_v59  ;;  %v1688_v59 = vpack.c.bf16 %v342_v58, %v340_v57  ;;  %1695 = vmatprep.subr.bf16.mxu0 %v1694_v5  ;;  %v563_v24 = vld [vmem:[%s2754_s29 + $0x30] sm:$0xff]  ;;  %v582_v27 = vld [vmem:[%s2754_s29 + $0xc8] sm:$0xff]  ;;  %v565_v30 = vld [vmem:[%s2754_s29 + $0x40] sm:$0xff] }
  0x3b   :  { %1661 = vmatpush1.bf16.msra.mxu1 %v1660_v0  ;;  %v346_v0 = vld [vmem:[%s2752_s2 + $0x1f0] sm:$0xff]  ;;  %s2758_s2 = sld [smem:[#allocation12_spill]] }
  0x3c   :  { %1663 = vmatprep.subr.bf16.mxu1 %v1662_v1  ;;  %v1692_v1 = vpack.c.bf16 %v346_v0, %v344_v63 }
  0x3f   :  { %1665 = vmatpush1.bf16.msra.mxu1 %v1664_v6  ;;  %v558_v6 = vld [vmem:[%s2754_s29 + $0x8] sm:$0xff] }
  0x40   :  { %1667 = vmatprep.subr.bf16.mxu1 %v1666_v7  ;;  %v575_v7 = vld [vmem:[%s2754_s29 + $0x90] sm:$0xff]  ;;  %v1696_v9 = vpack.c.bf16 %v558_v6, %v557_v4 }
  0x41   :  { %v1698_v10 = vpack.c.bf16 %v576_v8, %v575_v7 }
  0x43   :  { %1669 = vmatpush1.bf16.msra.mxu1 %v1668_v12  ;;  %v560_v12 = vld [vmem:[%s2754_s29 + $0x18] sm:$0xff] }
  0x44   :  { %1671 = vmatprep.subr.bf16.mxu1 %v1670_v13  ;;  %v577_v13 = vld [vmem:[%s2754_s29 + $0xa0] sm:$0xff]  ;;  %v1700_v16 = vpack.c.bf16 %v560_v12, %v559_v11 }
  0x45   :  { %v1702_v17 = vpack.c.bf16 %v578_v15, %v577_v13 }
  0x47   :  { %1673 = vmatpush1.bf16.msra.mxu1 %v1672_v19  ;;  %v562_v19 = vld [vmem:[%s2754_s29 + $0x28] sm:$0xff] }
  0x48   :  { %1675 = vmatprep.subr.bf16.mxu1 %v1674_v20  ;;  %v579_v20 = vld [vmem:[%s2754_s29 + $0xb0] sm:$0xff]  ;;  %v1704_v22 = vpack.c.bf16 %v562_v19, %v561_v18 }
  0x49   :  { %v1706_v23 = vpack.c.bf16 %v580_v21, %v579_v20 }
  0x4b   :  { %1677 = vmatpush1.bf16.msra.mxu1 %v1676_v25  ;;  %v564_v25 = vld [vmem:[%s2754_s29 + $0x38] sm:$0xff] }
  0x4c   :  { %1679 = vmatprep.subr.bf16.mxu1 %v1678_v26  ;;  %v581_v26 = vld [vmem:[%s2754_s29 + $0xc0] sm:$0xff]  ;;  %v1708_v28 = vpack.c.bf16 %v564_v25, %v563_v24 }
  0x4d   :  { %v1710_v29 = vpack.c.bf16 %v582_v27, %v581_v26 }
  0x4f   :  { %1681 = vmatpush1.bf16.msra.mxu1 %v1680_v31  ;;  %v566_v31 = vld [vmem:[%s2754_s29 + $0x48] sm:$0xff] }
  0x50   :  { %1683 = vmatprep.subr.bf16.mxu1 %v1682_v32  ;;  %v1712_v32 = vpack.c.bf16 %v566_v31, %v565_v30  ;;  %v583_v31 = vld [vmem:[%s2754_s29 + $0xd0] sm:$0xff] }
  0x53   :  { %1685 = vmatpush1.bf16.msra.mxu1 %v1684_v35  ;;  %v2307_v35 = vsub.s32 0, %v120_v34 }
  0x54   :  { %1687 = vmatprep.subr.bf16.mxu1 %v1686_v56 }
  0x57   :  { %1689 = vmatpush1.bf16.msra.mxu1 %v1688_v59 }
  0x58   :  { %1691 = vmatprep.subr.bf16.mxu1 %v1690_v62 }
  0x5b   :  { %1693 = vmatpush1.bf16.msra.mxu1 %v1692_v1 }
  0x9f   :  { %v2179_v37 = vpop.xlane.xlu0 %86  ;;  %v2185_v40 = vpop.xlane.xlu1 %92 }
  0xa0   :  { %v109_v38 = vmul.f32 %v103_v36, %v2179_v37  ;;  %v111_v44 = vmul.f32 %v105_v42, %v2185_v40  ;;  %v117_v36 = vld [vmem:[%s2755_s6] sm:$0x3]  ;;  %s1844_s6 = smov 48  }
  0xa2   :  { %1447 = vmatmul.mubr.msk.f32.vlgmr.msra.gmra.mrb[0].mxu0 %vm84_vm0, %v109_v38  ;;  %v2312_v38 = vsub.s32 1, %v120_v34  ;;  %v567_v34 = vld [vmem:[%s2754_s29 + $0x50] sm:$0xff] }
  0xa3   :  { %v2188_v41 = vpop.xlane.xlu0 %89  ;;  %217 = vmatprep.mubr.f32.mxu0 %v1839_v14  ;;  %v2201_v46 = vpop.xlane.xlu1 %95  ;;  %1697 = vmatpush3.bf16.msra.mxu0 %v1696_v9 }
  0xa4   :  { %v110_v43 = vmul.f32 %v104_v39, %v2188_v41  ;;  %v112_v47 = vmul.f32 %v106_v45, %v2201_v46  ;;  %1699 = vmatprep.subr.bf16.mxu0 %v1698_v10  ;;  %v122_v39 = vrot.slane %v117_v36, %v2307_v35  ;;  %v126_v42 = vrot.slane %v117_v36, %v2312_v38  ;;  %v568_v36 = vld [vmem:[%s2754_s29 + $0x58] sm:$0xff] }
  0xa6   :  { %1448 = vmatmul.mubr.msk.f32.gmra.mrb[2].mxu0 %vm84_vm0, %v110_v43 }
  0xa7   :  { %223 = vmatprep.mubr.f32.mxu0 %v1839_v14  ;;  %v2209_v49 = vpop.xlane.xlu0 %98  ;;  %v2217_v52 = vpop.xlane.xlu1 %101  ;;  %1701 = vmatpush3.bf16.msra.mxu0 %v1700_v16 }
  0xa8   :  { %v113_v50 = vmul.f32 %v107_v48, %v2209_v49  ;;  %v114_v53 = vmul.f32 %v108_v51, %v2217_v52  ;;  %1703 = vmatprep.subr.bf16.mxu0 %v1702_v17 }
  0xaa   :  { %1449 = vmatmul.mubr.msk.f32.gmra.mrb[4].mxu0 %vm84_vm0, %v111_v44 }
  0xab   :  { %229 = vmatprep.mubr.f32.mxu0 %v1839_v14  ;;  %1705 = vmatpush3.bf16.msra.mxu0 %v1704_v22 }
  0xac   :  { %1707 = vmatprep.subr.bf16.mxu0 %v1706_v23 }
  0xae   :  { %1450 = vmatmul.mubr.msk.f32.gmra.mrb[6].mxu0 %vm84_vm0, %v112_v47 }
  0xaf   :  { %235 = vmatprep.mubr.f32.mxu0 %v1839_v14  ;;  %1709 = vmatpush3.bf16.msra.mxu0 %v1708_v28 }
  0xb0   :  { %1711 = vmatprep.subr.bf16.mxu0 %v1710_v29 }
  0xb2   :  { %1451 = vmatmul.mubr.msk.f32.gmra.mrb[8].mxu0 %vm84_vm0, %v113_v50 }
  0xb3   :  { %241 = vmatprep.mubr.f32.mxu0 %v1839_v14  ;;  %1713 = vmatpush3.bf16.msra.mxu0 %v1712_v32  ;;  %v584_v32 = vld [vmem:[%s2754_s29 + $0xd8] sm:$0xff] }
  0xb4   :  { %v1714_v33 = vpack.c.bf16 %v584_v32, %v583_v31 }
  0xb6   :  { %1452 = vmatmul.mubr.msk.f32.gmra.mrb[10].mxu0 %vm84_vm0, %v114_v53  ;;  %1715 = vmatprep.subr.bf16.mxu0 %v1714_v33 }
 0x175   :  { %v213_v43 = vpop.f32.mrb[0].mxu0 }
 0x176   :  { %v214_v44 = vadd.f32 %v213_v43, %v122_v39  ;;  %v215_v45 = vpop.f32.mrb[1].mxu0  ;;  %v586_v43 = vld [vmem:[%s2754_s29 + $0xe8] sm:$0xff] }
 0x177   :  { %v216_v47 = vadd.f32 %v215_v45, %v126_v42  ;;  %v569_v45 = vld [vmem:[%s2754_s29 + $0x60] sm:$0xff] }
 0x178   :  { %v260_v48 = vmul.f32 0.2, %v214_v44  ;;  %vm248_vm2 = vcmp.gt.f32.partialorder %v214_v44, 0.0 }
 0x179   :  { %v219_v50 = vpop.f32.mrb[2].mxu0  ;;  %vm249_vm1 = vcmp.gt.f32.partialorder %v216_v47, 0.0  ;;  %v261_v51 = vmul.f32 0.2, %v216_v47 }
 0x17a   :  { %v220_v53 = vadd.f32 %v219_v50, %v122_v39  ;;  %v221_v54 = vpop.f32.mrb[3].mxu0  ;;  %v272_v58 = vsel %vm248_vm2, %v214_v44, %v260_v48  ;;  %v587_v50 = vld [vmem:[%s2754_s29 + $0xf0] sm:$0xff] }
 0x17b   :  { %v222_v55 = vadd.f32 %v221_v54, %v126_v42  ;;  %v273_v56 = vsel %vm249_vm1, %v216_v47, %v261_v51  ;;  %v570_v47 = vld [vmem:[%s2754_s29 + $0x68] sm:$0xff]  ;;  %v588_v51 = vld [vmem:[%s2754_s29 + $0xf8] sm:$0xff]  ;;  %v571_v54 = vld [vmem:[%s2754_s29 + $0x70] sm:$0xff] }
 0x17c   :  { %v262_v57 = vmul.f32 0.2, %v220_v53  ;;  %424 = vmatprep.mubr.f32.mxu1 %v273_v56  ;;  %vm250_vm4 = vcmp.gt.f32.partialorder %v220_v53, 0.0  ;;  %v1720_v48 = vpack.c.bf16 %v570_v47, %v569_v45 }
 0x17d   :  { %v263_v59 = vmul.f32 0.2, %v222_v55  ;;  %v225_v60 = vpop.f32.mrb[4].mxu0  ;;  %425 = vmatmul.mubr.f32.vlgmr.msra.gmra.mrb[0].mxu1 %v272_v58  ;;  %vm251_vm3 = vcmp.gt.f32.partialorder %v222_v55, 0.0  ;;  %v710_v58 = vld [vmem:[%s2721_s10 + $0x8] sm:$0xff] }
 0x17e   :  { %v226_v61 = vadd.f32 %v225_v60, %v122_v39  ;;  %v227_v62 = vpop.f32.mrb[5].mxu0  ;;  %v274_v2 = vsel %vm250_vm4, %v220_v53, %v262_v57  ;;  %v1722_v53 = vpack.c.bf16 %v588_v51, %v587_v50  ;;  %v709_v57 = vld [vmem:[%s2721_s10] sm:$0xff] }
 0x17f   :  { %v228_v63 = vadd.f32 %v227_v62, %v126_v42  ;;  %v275_v0 = vsel %vm251_vm3, %v222_v55, %v263_v59  ;;  %v572_v55 = vld [vmem:[%s2754_s29 + $0x78] sm:$0xff]  ;;  %v1726_v59 = vpack.c.bf16 %v710_v58, %v709_v57  ;;  %v348_v60 = vld [vmem:[%s2756_s30] sm:$0x3] }
 0x180   :  { %v264_v1 = vmul.f32 0.2, %v226_v61  ;;  %430 = vmatprep.mubr.f32.mxu1 %v275_v0  ;;  %vm252_vm6 = vcmp.gt.f32.partialorder %v226_v61, 0.0  ;;  %v1724_v56 = vpack.c.bf16 %v572_v55, %v571_v54  ;;  %v2365_v62 = vrot.slane %v348_v60, %v2312_v38 }
 0x181   :  { %v265_v3 = vmul.f32 0.2, %v228_v63  ;;  %v231_v4 = vpop.f32.mrb[6].mxu0  ;;  %431 = vmatmul.mubr.f32.gmra.mrb[2].mxu1 %v274_v2  ;;  %vm253_vm5 = vcmp.gt.f32.partialorder %v228_v63, 0.0  ;;  %v521_v2 = vld [vmem:[%s2758_s2] sm:$0x3] }
 0x182   :  { %v232_v5 = vadd.f32 %v231_v4, %v122_v39  ;;  %v233_v6 = vpop.f32.mrb[7].mxu0  ;;  %v276_v10 = vsel %vm252_vm6, %v226_v61, %v264_v1  ;;  %v2362_v61 = vrot.slane %v348_v60, %v2307_v35  ;;  %s1850_s2 = smov 4  }
 0x183   :  { %v234_v7 = vadd.f32 %v233_v6, %v126_v42  ;;  %v277_v8 = vsel %vm253_vm5, %v228_v63, %v265_v3  ;;  %v497_v63 = vld [vmem:[%s2757_s25] sm:$0x3] }
 0x184   :  { %v266_v9 = vmul.f32 0.2, %v232_v5  ;;  %436 = vmatprep.mubr.f32.mxu1 %v277_v8  ;;  %vm254_vm8 = vcmp.gt.f32.partialorder %v232_v5, 0.0  ;;  %v2375_v4 = vrot.slane %v497_v63, %v2307_v35  ;;  %v2382_v8 = vrot.slane %v521_v2, %v2307_v35 }
 0x185   :  { %v267_v11 = vmul.f32 0.2, %v234_v7  ;;  %v237_v12 = vpop.f32.mrb[8].mxu0  ;;  %437 = vmatmul.mubr.f32.gmra.mrb[4].mxu1 %v276_v10  ;;  %vm255_vm7 = vcmp.gt.f32.partialorder %v234_v7, 0.0 }
 0x186   :  { %v238_v13 = vadd.f32 %v237_v12, %v122_v39  ;;  %v239_v15 = vpop.f32.mrb[9].mxu0  ;;  %v278_v19 = vsel %vm254_vm8, %v232_v5, %v266_v9 }
 0x187   :  { %v240_v16 = vadd.f32 %v239_v15, %v126_v42  ;;  %v279_v17 = vsel %vm255_vm7, %v234_v7, %v267_v11  ;;  %v2379_v7 = vrot.slane %v497_v63, %v2312_v38  ;;  %v2386_v15 = vrot.slane %v521_v2, %v2312_v38 }
 0x188   :  { %v268_v18 = vmul.f32 0.2, %v238_v13  ;;  %442 = vmatprep.mubr.f32.mxu1 %v279_v17  ;;  %vm256_vm10 = vcmp.gt.f32.partialorder %v238_v13, 0.0 }
 0x189   :  { %v269_v20 = vmul.f32 0.2, %v240_v16  ;;  %v243_v21 = vpop.f32.mrb[10].mxu0  ;;  %443 = vmatmul.mubr.f32.gmra.mrb[6].mxu1 %v278_v19  ;;  %vm257_vm9 = vcmp.gt.f32.partialorder %v240_v16, 0.0 }
 0x18a   :  { %v244_v22 = vadd.f32 %v243_v21, %v122_v39  ;;  %v245_v23 = vpop.f32.mrb[11].mxu0  ;;  %v280_v27 = vsel %vm256_vm10, %v238_v13, %v268_v18  ;;  %v1716_v39 = vpack.c.bf16 %v568_v36, %v567_v34 }
 0x18b   :  { %v246_v24 = vadd.f32 %v245_v23, %v126_v42  ;;  %v281_v25 = vsel %vm257_vm9, %v240_v16, %v269_v20  ;;  %v585_v42 = vld [vmem:[%s2754_s29 + $0xe0] sm:$0xff] }
 0x18c   :  { %v270_v26 = vmul.f32 0.2, %v244_v22  ;;  %448 = vmatprep.mubr.f32.mxu1 %v281_v25  ;;  %vm258_vm12 = vcmp.gt.f32.partialorder %v244_v22, 0.0  ;;  %1717 = vmatpush3.bf16.msra.mxu0 %v1716_v39  ;;  %v1718_v44 = vpack.c.bf16 %v586_v43, %v585_v42 }
 0x18d   :  { %v271_v28 = vmul.f32 0.2, %v246_v24  ;;  %449 = vmatmul.mubr.f32.gmra.mrb[8].mxu1 %v280_v27  ;;  %vm259_vm11 = vcmp.gt.f32.partialorder %v246_v24, 0.0 }
 0x18e   :  { %v282_v30 = vsel %vm258_vm12, %v244_v22, %v270_v26  ;;  %1719 = vmatprep.subr.bf16.mxu0 %v1718_v44 }
 0x18f   :  { %v283_v29 = vsel %vm259_vm11, %v246_v24, %v271_v28  ;;  %vm724_vm11 = vcmask 523264  }
 0x190   :  { %454 = vmatprep.mubr.f32.mxu1 %v283_v29  ;;  %1721 = vmatpush3.bf16.msra.mxu0 %v1720_v48 }
 0x191   :  { %455 = vmatmul.mubr.f32.gmra.mrb[10].mxu1 %v282_v30  ;;  %1723 = vmatprep.subr.bf16.mxu0 %v1722_v53 }
 0x194   :  { %1725 = vmatpush3.bf16.msra.mxu0 %v1724_v56 }
 0x195   :  { %1727 = vmatprep.subr.bf16.mxu0 %v1726_v59 }
 0x250   :  { %v426_v0 = vpop.f32.mrb[0].mxu1 }
 0x251   :  { %v427_v1 = vadd.f32 %v426_v0, %v2362_v61  ;;  %v428_v3 = vpop.f32.mrb[1].mxu1 }
 0x252   :  { %v429_v5 = vadd.f32 %v428_v3, %v2365_v62 }
 0x253   :  { %vm461_vm13 = vcmp.gt.f32.partialorder %v427_v1, 0.0  ;;  %v473_v6 = vmul.f32 0.2, %v427_v1 }
 0x254   :  { %vm462_vm14 = vcmp.gt.f32.partialorder %v429_v5, 0.0  ;;  %v474_v9 = vmul.f32 0.2, %v429_v5  ;;  %v432_v10 = vpop.f32.mrb[2].mxu1 }
 0x255   :  { %v485_v11 = vsel %vm461_vm13, %v427_v1, %v473_v6  ;;  %v433_v12 = vadd.f32 %v432_v10, %v2362_v61  ;;  %v434_v13 = vpop.f32.mrb[3].mxu1 }
 0x256   :  { %v509_v16 = vmul.f32 %v2375_v4, %v485_v11  ;;  %v486_v17 = vsel %vm462_vm14, %v429_v5, %v474_v9  ;;  %v435_v18 = vadd.f32 %v434_v13, %v2365_v62 }
 0x257   :  { %v510_v19 = vmul.f32 %v2379_v7, %v486_v17  ;;  %vm463_vm15 = vcmp.gt.f32.partialorder %v433_v12, 0.0  ;;  %v475_v20 = vmul.f32 0.2, %v433_v12 }
 0x258   :  { %v533_v21 = vadd.f32 %v2382_v8, %v509_v16  ;;  %vm464_vm1 = vcmp.gt.f32.partialorder %v435_v18, 0.0  ;;  %v476_v22 = vmul.f32 0.2, %v435_v18  ;;  %v438_v23 = vpop.f32.mrb[4].mxu1 }
 0x259   :  { %v487_v24 = vsel %vm463_vm15, %v433_v12, %v475_v20  ;;  %v439_v25 = vadd.f32 %v438_v23, %v2362_v61  ;;  %v440_v26 = vpop.f32.mrb[5].mxu1  ;;  %v534_v27 = vadd.f32 %v2386_v15, %v510_v19 }
 0x25a   :  { %v511_v28 = vmul.f32 %v2375_v4, %v487_v24  ;;  %v488_v29 = vsel %vm464_vm1, %v435_v18, %v476_v22  ;;  %v441_v30 = vadd.f32 %v440_v26, %v2365_v62  ;;  %v545_v34 = vmul.f32 %v533_v21, %v2179_v37 }
 0x25b   :  { %v512_v31 = vmul.f32 %v2379_v7, %v488_v29  ;;  %vm465_vm2 = vcmp.gt.f32.partialorder %v439_v25, 0.0  ;;  %v477_v32 = vmul.f32 0.2, %v439_v25  ;;  %v546_v33 = vmul.f32 %v534_v27, %v2179_v37 }
 0x25c   :  { %vm466_vm3 = vcmp.gt.f32.partialorder %v441_v30, 0.0  ;;  %v478_v36 = vmul.f32 0.2, %v441_v30  ;;  %v444_v39 = vpop.f32.mrb[6].mxu1  ;;  %v535_v42 = vadd.f32 %v2382_v8, %v511_v28 }
 0x25d   :  { %v489_v43 = vsel %vm465_vm2, %v439_v25, %v477_v32  ;;  %v445_v44 = vadd.f32 %v444_v39, %v2362_v61  ;;  %v446_v45 = vpop.f32.mrb[7].mxu1  ;;  %660 = vmatprep.mubr.f32.mxu0 %v546_v33  ;;  %v536_v47 = vadd.f32 %v2386_v15, %v512_v31  ;;  %v716_v39 = vld [vmem:[%s2721_s10 + $0x38] sm:$0xff] }
 0x25e   :  { %v513_v48 = vmul.f32 %v2375_v4, %v489_v43  ;;  %v490_v50 = vsel %vm466_vm3, %v441_v30, %v478_v36  ;;  %v447_v51 = vadd.f32 %v446_v45, %v2365_v62  ;;  %661 = vmatmul.mubr.f32.vlgmr.msra.gmra.mrb[12].mxu0 %v545_v34  ;;  %v547_v57 = vmul.f32 %v535_v42, %v2188_v41  ;;  %v715_v36 = vld [vmem:[%s2721_s10 + $0x30] sm:$0xff] }
 0x25f   :  { %v514_v37 = vmul.f32 %v2379_v7, %v490_v50  ;;  %vm467_vm4 = vcmp.gt.f32.partialorder %v445_v44, 0.0  ;;  %v479_v53 = vmul.f32 0.2, %v445_v44  ;;  %v548_v54 = vmul.f32 %v536_v47, %v2188_v41  ;;  %1729 = vmatpush3.bf16.msra.mxu0 %v1726_v59 }
 0x260   :  { %vm468_vm5 = vcmp.gt.f32.partialorder %v447_v51, 0.0  ;;  %v480_v55 = vmul.f32 0.2, %v447_v51  ;;  %v450_v56 = vpop.f32.mrb[8].mxu1  ;;  %v537_v58 = vadd.f32 %v2382_v8, %v513_v48  ;;  %v1738_v42 = vpack.c.bf16 %v716_v39, %v715_v36 }
 0x261   :  { %v491_v60 = vsel %vm467_vm4, %v445_v44, %v479_v53  ;;  %v451_v63 = vadd.f32 %v450_v56, %v2362_v61  ;;  %v452_v0 = vpop.f32.mrb[9].mxu1  ;;  %665 = vmatprep.mubr.f32.mxu0 %v548_v54  ;;  %v538_v1 = vadd.f32 %v2386_v15, %v514_v37  ;;  %v1453_v44 = vld [vmem:[%s2720_s9] ss:$0 sm:$0xff]  ;;  %vm884_vm4 = vcmask 1041408   ;;  %s1843_s9 = smov 16  }
 0x262   :  { %v515_v2 = vmul.f32 %v2375_v4, %v491_v60  ;;  %v492_v3 = vsel %vm468_vm5, %v447_v51, %v480_v55  ;;  %v453_v5 = vadd.f32 %v452_v0, %v2365_v62  ;;  %666 = vmatmul.mubr.f32.gmra.mrb[14].mxu0 %v547_v57  ;;  %v549_v11 = vmul.f32 %v537_v58, %v2185_v40 }
 0x263   :  { %v516_v59 = vmul.f32 %v2379_v7, %v492_v3  ;;  %vm469_vm6 = vcmp.gt.f32.partialorder %v451_v63, 0.0  ;;  %v481_v6 = vmul.f32 0.2, %v451_v63  ;;  %v550_v41 = vmul.f32 %v538_v1, %v2185_v40 }
 0x264   :  { %vm470_vm7 = vcmp.gt.f32.partialorder %v453_v5, 0.0  ;;  %v482_v9 = vmul.f32 0.2, %v453_v5  ;;  %v456_v10 = vpop.f32.mrb[10].mxu1  ;;  %v539_v12 = vadd.f32 %v2382_v8, %v515_v2 }
 0x265   :  { %v493_v13 = vsel %vm469_vm6, %v451_v63, %v481_v6  ;;  %v457_v16 = vadd.f32 %v456_v10, %v2362_v61  ;;  %v458_v17 = vpop.f32.mrb[11].mxu1  ;;  %670 = vmatprep.mubr.f32.mxu0 %v550_v41  ;;  %v540_v18 = vadd.f32 %v2386_v15, %v516_v59 }
 0x266   :  { %v517_v19 = vmul.f32 %v2375_v4, %v493_v13  ;;  %v494_v20 = vsel %vm470_vm7, %v453_v5, %v482_v9  ;;  %v459_v21 = vadd.f32 %v458_v17, %v2365_v62  ;;  %671 = vmatmul.mubr.f32.gmra.mrb[16].mxu0 %v549_v11  ;;  %v551_v61 = vmul.f32 %v539_v12, %v2201_v46 }
 0x267   :  { %v518_v22 = vmul.f32 %v2379_v7, %v494_v20  ;;  %vm471_vm8 = vcmp.gt.f32.partialorder %v457_v16, 0.0  ;;  %v483_v23 = vmul.f32 0.2, %v457_v16  ;;  %v552_v40 = vmul.f32 %v540_v18, %v2201_v46 }
 0x268   :  { %vm472_vm9 = vcmp.gt.f32.partialorder %v459_v21, 0.0  ;;  %v484_v24 = vmul.f32 0.2, %v459_v21  ;;  %v541_v25 = vadd.f32 %v2382_v8, %v517_v19  ;;  %vm892_vm7 = vcmask 1043456  }
 0x269   :  { %v495_v26 = vsel %vm471_vm8, %v457_v16, %v483_v23  ;;  %675 = vmatprep.mubr.f32.mxu0 %v552_v40  ;;  %v542_v27 = vadd.f32 %v2386_v15, %v518_v22  ;;  %v2464_v40 = vld [vmem:[%s2722_s11] ss:$0 sm:$0xff] }
 0x26a   :  { %v519_v28 = vmul.f32 %v2375_v4, %v495_v26  ;;  %v496_v62 = vsel %vm472_vm9, %v459_v21, %v484_v24  ;;  %676 = vmatmul.mubr.f32.gmra.mrb[18].mxu0 %v551_v61  ;;  %v553_v31 = vmul.f32 %v541_v25, %v2209_v49  ;;  %v711_v4 = vld [vmem:[%s2721_s10 + $0x10] sm:$0xff]  ;;  %v2470_v26 = vld [vmem:[%s2723_s12] ss:$0 sm:$0xff]  ;;  %s1840_s12 = smov 8  }
 0x26b   :  { %v520_v29 = vmul.f32 %v2379_v7, %v496_v62  ;;  %v554_v30 = vmul.f32 %v542_v27, %v2209_v49  ;;  %v712_v49 = vld [vmem:[%s2721_s10 + $0x18] sm:$0xff]  ;;  %v939_v62 = vld [vmem:[%s2725_s14 + $0x8] sm:$0xff] }
 0x26c   :  { %v543_v32 = vadd.f32 %v2382_v8, %v519_v28  ;;  %v1730_v7 = vpack.c.bf16 %v712_v49, %v711_v4  ;;  %v713_v8 = vld [vmem:[%s2721_s10 + $0x20] sm:$0xff] }
 0x26d   :  { %680 = vmatprep.mubr.f32.mxu0 %v554_v30  ;;  %v544_v46 = vadd.f32 %v2386_v15, %v520_v29  ;;  %v941_v29 = vld [vmem:[%s2725_s14 + $0x18] sm:$0xff] }
 0x26e   :  { %681 = vmatmul.mubr.f32.gmra.mrb[20].mxu0 %v553_v31  ;;  %v555_v34 = vmul.f32 %v543_v32, %v2217_v52  ;;  %1731 = vmatprep.subr.bf16.mxu0 %v1730_v7  ;;  %v1742_v31 = vpack.c.bf16 %v941_v29, %v939_v62  ;;  %v938_v32 = vld [vmem:[%s2725_s14] sm:$0xff]  ;;  %v1063_v29 = vld [vmem:[%s2727_s16 + $0x88] sm:$0xff] }
 0x26f   :  { %v556_v33 = vmul.f32 %v544_v46, %v2217_v52  ;;  %1733 = vmatpush3.bf16.msra.mxu0 %v1730_v7  ;;  %v714_v52 = vld [vmem:[%s2721_s10 + $0x28] sm:$0xff]  ;;  %v940_v46 = vld [vmem:[%s2725_s14 + $0x10] sm:$0xff] }
 0x270   :  { %v1734_v15 = vpack.c.bf16 %v714_v52, %v713_v8  ;;  %v1744_v4 = vpack.c.bf16 %v940_v46, %v938_v32  ;;  %v943_v52 = vld [vmem:[%s2725_s14 + $0x28] sm:$0xff] }
 0x271   :  { %685 = vmatprep.mubr.f32.mxu0 %v556_v33  ;;  %v1047_v46 = vld [vmem:[%s2727_s16 + $0x8] sm:$0xff] }
 0x272   :  { %686 = vmatmul.mubr.f32.gmra.mrb[22].mxu0 %v555_v34  ;;  %1735 = vmatprep.subr.bf16.mxu0 %v1734_v15  ;;  %v2488_v34 = vld [vmem:[%s2724_s13] ss:$0 sm:$0xff] }
 0x273   :  { %1737 = vmatpush3.bf16.msra.mxu0 %v1734_v15  ;;  %v945_v15 = vld [vmem:[%s2725_s14 + $0x38] sm:$0xff] }
 0x274   :  { %1739 = vmatprep.subr.bf16.mxu0 %v1738_v42 }
 0x277   :  { %1741 = vmatpush3.bf16.msra.mxu0 %v1738_v42  ;;  %v1746_v42 = vpack.c.bf16 %v945_v15, %v943_v52  ;;  %v1049_v52 = vld [vmem:[%s2727_s16 + $0x18] sm:$0xff] }
 0x278   :  { %1743 = vmatprep.subr.bf16.mxu0 %v1742_v31 }
 0x331   :  { %v1505_v43 = vpop.f32.mrb[12].mxu0 }
 0x332   :  { %v1506_v45 = vpop.f32.mrb[13].mxu0 }
 0x333   :  { %v1507_v47 = vadd.f32 %v1506_v45, %v1505_v43  ;;  %v942_v43 = vld [vmem:[%s2725_s14 + $0x20] sm:$0xff] }
 0x335   :  { %v663_v48 = vadd.f32 %v1507_v47, %v1453_v44  ;;  %v1508_v50 = vpop.f32.mrb[14].mxu0 }
 0x336   :  { %v1509_v51 = vpop.f32.mrb[15].mxu0 }
 0x337   :  { %v697_v37 = vmul.f32 0.2, %v663_v48  ;;  %v1510_v53 = vadd.f32 %v1509_v51, %v1508_v50  ;;  %vm691_vm10 = vcmp.gt.f32.partialorder %v663_v48, 0.0 }
 0x339   :  { %v668_v54 = vadd.f32 %v1510_v53, %v1453_v44  ;;  %v1511_v55 = vpop.f32.mrb[16].mxu0  ;;  %v703_v56 = vsel %vm691_vm10, %v663_v48, %v697_v37  ;;  %vm926_vm10 = vcmask 130048  }
 0x33a   :  { %v1512_v57 = vpop.f32.mrb[17].mxu0  ;;  %1598 = vmatprep.mubr.msk.f32.mxu0 %vm724_vm11, %v703_v56  ;;  %v949_v56 = vld [vmem:[%s2725_s14 + $0x58] sm:$0xff] }
 0x33b   :  { %vm692_vm12 = vcmp.gt.f32.partialorder %v668_v54, 0.0  ;;  %v698_v58 = vmul.f32 0.2, %v668_v54  ;;  %v1513_v60 = vadd.f32 %v1512_v57, %v1511_v55  ;;  %v947_v55 = vld [vmem:[%s2725_s14 + $0x48] sm:$0xff] }
 0x33d   :  { %v704_v63 = vsel %vm692_vm12, %v668_v54, %v698_v58  ;;  %v673_v0 = vadd.f32 %v1513_v60, %v1453_v44  ;;  %v1514_v1 = vpop.f32.mrb[18].mxu0  ;;  %v1750_v58 = vpack.c.bf16 %v949_v56, %v947_v55  ;;  %v946_v60 = vld [vmem:[%s2725_s14 + $0x40] sm:$0xff]  ;;  %v1069_v55 = vld [vmem:[%s2727_s16 + $0xb8] sm:$0xff]  ;;  %vm928_vm12 = vcmask 195584  }
 0x33e   :  { %v1515_v2 = vpop.f32.mrb[19].mxu0  ;;  %1599 = vmatmul.mubr.msk.f32.vlgmr.msra.gmra.mrb[24].mxu0 %vm724_vm11, %v704_v63  ;;  %v948_v63 = vld [vmem:[%s2725_s14 + $0x50] sm:$0xff] }
 0x33f   :  { %v699_v3 = vmul.f32 0.2, %v673_v0  ;;  %v1516_v5 = vadd.f32 %v1515_v2, %v1514_v1  ;;  %vm693_vm13 = vcmp.gt.f32.partialorder %v673_v0, 0.0  ;;  %1745 = vmatpush1.bf16.msra.mxu0 %v1744_v4  ;;  %v1752_v2 = vpack.c.bf16 %v948_v63, %v946_v60  ;;  %v1065_v4 = vld [vmem:[%s2727_s16 + $0x98] sm:$0xff]  ;;  %v1052_v60 = vld [vmem:[%s2727_s16 + $0x30] sm:$0xff] }
 0x340   :  { %1747 = vmatprep.subr.bf16.mxu0 %v1746_v42  ;;  %v1053_v63 = vld [vmem:[%s2727_s16 + $0x38] sm:$0xff] }
 0x341   :  { %v678_v59 = vadd.f32 %v1516_v5, %v1453_v44  ;;  %v1517_v6 = vpop.f32.mrb[20].mxu0  ;;  %v705_v41 = vsel %vm693_vm13, %v673_v0, %v699_v3  ;;  %vm930_vm13 = vcmask 261120  }
 0x342   :  { %v1518_v9 = vpop.f32.mrb[21].mxu0  ;;  %1601 = vmatprep.mubr.msk.f32.mxu0 %vm724_vm11, %v705_v41  ;;  %v953_v41 = vld [vmem:[%s2725_s14 + $0x78] sm:$0xff] }
 0x343   :  { %v700_v10 = vmul.f32 0.2, %v678_v59  ;;  %v1519_v11 = vadd.f32 %v1518_v9, %v1517_v6  ;;  %vm694_vm14 = vcmp.gt.f32.partialorder %v678_v59, 0.0  ;;  %v951_v6 = vld [vmem:[%s2725_s14 + $0x68] sm:$0xff] }
 0x345   :  { %v683_v12 = vadd.f32 %v1519_v11, %v1453_v44  ;;  %v1520_v13 = vpop.f32.mrb[22].mxu0  ;;  %v706_v16 = vsel %vm694_vm14, %v678_v59, %v700_v10  ;;  %v1754_v11 = vpack.c.bf16 %v953_v41, %v951_v6  ;;  %v1072_v6 = vld [vmem:[%s2727_s16 + $0xd0] sm:$0xff]  ;;  %v1073_v41 = vld [vmem:[%s2727_s16 + $0xd8] sm:$0xff]  ;;  %vm932_vm14 = vcmask 326656  }
 0x346   :  { %v1521_v17 = vpop.f32.mrb[23].mxu0  ;;  %1602 = vmatmul.mubr.msk.f32.gmra.mrb[26].mxu0 %vm724_vm11, %v706_v16 }
 0x347   :  { %v701_v18 = vmul.f32 0.2, %v683_v12  ;;  %v1522_v19 = vadd.f32 %v1521_v17, %v1520_v13  ;;  %vm695_vm15 = vcmp.gt.f32.partialorder %v683_v12, 0.0  ;;  %v952_v13 = vld [vmem:[%s2725_s14 + $0x70] sm:$0xff] }
 0x349   :  { %v688_v20 = vadd.f32 %v1522_v19, %v1453_v44  ;;  %v707_v21 = vsel %vm695_vm15, %v683_v12, %v701_v18  ;;  %v944_v44 = vld [vmem:[%s2725_s14 + $0x30] sm:$0xff]  ;;  %v950_v12 = vld [vmem:[%s2725_s14 + $0x60] sm:$0xff]  ;;  %s1842_s14 = smov 24   ;;  %vm934_vm15 = vcmask 392192  }
 0x34a   :  { %1604 = vmatprep.mubr.msk.f32.mxu0 %vm724_vm11, %v707_v21  ;;  %v1748_v50 = vpack.c.bf16 %v944_v44, %v942_v43  ;;  %v1756_v19 = vpack.c.bf16 %v952_v13, %v950_v12  ;;  %v1057_v12 = vld [vmem:[%s2727_s16 + $0x58] sm:$0xff] }
 0x34b   :  { %v702_v22 = vmul.f32 0.2, %v688_v20  ;;  %vm696_vm1 = vcmp.gt.f32.partialorder %v688_v20, 0.0 }
 0x34c   :  { %1749 = vmatpush1.bf16.msra.mxu0 %v1748_v50 }
 0x34d   :  { %v708_v23 = vsel %vm696_vm1, %v688_v20, %v702_v22  ;;  %1751 = vmatprep.subr.bf16.mxu0 %v1750_v58  ;;  %vm936_vm1 = vcmask 457728  }
 0x34e   :  { %1605 = vmatmul.mubr.msk.f32.gmra.mrb[28].mxu0 %vm724_vm11, %v708_v23 }
 0x34f   :  { %1033 = vmatprep.mubr.f32.mxu0 %v1839_v14 }
 0x350   :  { %1753 = vmatpush1.bf16.msra.mxu0 %v1752_v2  ;;  %v1772_v2 = vpack.c.bf16 %v1053_v63, %v1052_v60 }
 0x351   :  { %1755 = vmatprep.subr.bf16.mxu0 %v1754_v11  ;;  %v1056_v11 = vld [vmem:[%s2727_s16 + $0x50] sm:$0xff] }
 0x352   :  { %v1780_v13 = vpack.c.bf16 %v1057_v12, %v1056_v11 }
 0x354   :  { %1757 = vmatpush1.bf16.msra.mxu0 %v1756_v19 }
 0x411   :  { %v1600_v24 = vpop.f32.mrb[24].mxu0 }
 0x412   :  { %v815_v61 = vadd.f32 %v1600_v24, %v2464_v40  ;;  %v809_v25 = vpop.f32.mrb[25].mxu0 }
 0x413   :  { %v810_v27 = vadd.f32 %v2464_v40, %v809_v25 }
 0x414   :  { %vm839_vm2 = vcmp.gt.f32.partialorder %v815_v61, 0.0  ;;  %v845_v28 = vmul.f32 0.2, %v815_v61 }
 0x415   :  { %vm838_vm3 = vcmp.gt.f32.partialorder %v810_v27, 0.0  ;;  %v844_v30 = vmul.f32 0.2, %v810_v27 }
 0x416   :  { %v851_v33 = vsel %vm839_vm2, %v815_v61, %v845_v28 }
 0x417   :  { %v864_v49 = vmul.f32 %v2470_v26, %v851_v33  ;;  %v850_v7 = vsel %vm838_vm3, %v810_v27, %v844_v30  ;;  %v1046_v30 = vld [vmem:[%s2727_s16] sm:$0xff]  ;;  %v1064_v33 = vld [vmem:[%s2727_s16 + $0x90] sm:$0xff]  ;;  %vm1848_vm3 = vmmov 0  }
 0x418   :  { %v863_v8 = vmul.f32 %v2470_v26, %v850_v7  ;;  %v1760_v7 = vpack.c.bf16 %v1047_v46, %v1046_v30  ;;  %v1058_v30 = vld [vmem:[%s2727_s16 + $0x60] sm:$0xff]  ;;  %v1076_v46 = vld [vmem:[%s2727_s16 + $0xf0] sm:$0xff] }
 0x419   :  { %v877_v36 = vadd.f32 %v2488_v34, %v864_v49  ;;  %v1603_v39 = vpop.f32.mrb[26].mxu0 }
 0x41a   :  { %v2506_v45 = vadd.f32 %v2488_v34, %v863_v8  ;;  %v825_v47 = vadd.f32 %v1603_v39, %v2464_v40  ;;  %v819_v48 = vpop.f32.mrb[27].mxu0  ;;  %v1762_v8 = vpack.c.bf16 %v1065_v4, %v1064_v33  ;;  %v1067_v39 = vld [vmem:[%s2727_s16 + $0xa8] sm:$0xff]  ;;  %v1077_v33 = vld [vmem:[%s2727_s16 + $0xf8] sm:$0xff] }
 0x41b   :  { %v820_v51 = vadd.f32 %v2464_v40, %v819_v48  ;;  %v886_v37 = vrot.slane %v877_v36, 6  ;;  %v893_v21 = vrot.slane %v877_v36, 4  ;;  %v1066_v36 = vld [vmem:[%s2727_s16 + $0xa0] sm:$0xff]  ;;  %v1786_v4 = vpack.c.bf16 %v1077_v33, %v1076_v46 }
 0x41c   :  { %vm841_vm5 = vcmp.gt.f32.partialorder %v825_v47, 0.0  ;;  %v847_v53 = vmul.f32 0.2, %v825_v47  ;;  %v885_v54 = vrot.slane %v2506_v45, 6  ;;  %v1766_v50 = vpack.c.bf16 %v1067_v39, %v1066_v36 }
 0x41d   :  { %vm840_vm6 = vcmp.gt.f32.partialorder %v820_v51, 0.0  ;;  %v846_v57 = vmul.f32 0.2, %v820_v51 }
 0x41e   :  { %v853_v0 = vsel %vm841_vm5, %v825_v47, %v847_v53  ;;  %v887_v1 = vsel %vm884_vm4, %v885_v54, %v886_v37  ;;  %v1068_v54 = vld [vmem:[%s2727_s16 + $0xb0] sm:$0xff]  ;;  %vm1849_vm5 = vmmov 1  }
 0x41f   :  { %v852_v3 = vsel %vm840_vm6, %v820_v51, %v846_v57  ;;  %888 = vrot.lane.b32.xlu0 %v887_v1, %s1840_s12  ;;  %v866_v5 = vmul.f32 %v2470_v26, %v853_v0  ;;  %v1051_v51 = vld [vmem:[%s2727_s16 + $0x28] sm:$0xff]  ;;  %v1770_v58 = vpack.c.bf16 %v1069_v55, %v1068_v54  ;;  %v1070_v0 = vld [vmem:[%s2727_s16 + $0xc0] sm:$0xff]  ;;  %vm1798_vm6 = vmpackc.low %vm892_vm7, %vm1849_vm5 }
 0x420   :  { %v865_v59 = vmul.f32 %v2470_v26, %v852_v3  ;;  %v1071_v1 = vld [vmem:[%s2727_s16 + $0xc8] sm:$0xff] }
 0x421   :  { %v1606_v9 = vpop.f32.mrb[28].mxu0  ;;  %v879_v10 = vadd.f32 %v2488_v34, %v866_v5  ;;  %v1774_v3 = vpack.c.bf16 %v1071_v1, %v1070_v0  ;;  %v1054_v5 = vld [vmem:[%s2727_s16 + $0x40] sm:$0xff] }
 0x422   :  { %v835_v16 = vadd.f32 %v1606_v9, %v2464_v40  ;;  %v829_v17 = vpop.f32.mrb[29].mxu0  ;;  %v878_v18 = vadd.f32 %v2488_v34, %v865_v59  ;;  %v1055_v59 = vld [vmem:[%s2727_s16 + $0x48] sm:$0xff]  ;;  %v1254_v1 = vld [vmem:[%s2731_s20] sm:$0xff] }
 0x423   :  { %v830_v20 = vadd.f32 %v2464_v40, %v829_v17  ;;  %904 = vrot.lane.b32.xlu1 %v879_v10, %s1841_s4  ;;  %v1062_v40 = vld [vmem:[%s2727_s16 + $0x80] sm:$0xff]  ;;  %v908_v43 = vrot.slane %v879_v10, 6  ;;  %v1776_v9 = vpack.c.bf16 %v1055_v59, %v1054_v5  ;;  %v1778_v10 = vpack.c.bf16 %v1073_v41, %v1072_v6 }
 0x424   :  { %vm843_vm8 = vcmp.gt.f32.partialorder %v835_v16, 0.0  ;;  %v849_v22 = vmul.f32 0.2, %v835_v16  ;;  %v899_v23 = vrot.slane %v878_v18, 2  ;;  %v894_v24 = vrot.slane %v878_v18, 4 }
 0x425   :  { %vm842_vm9 = vcmp.gt.f32.partialorder %v830_v20, 0.0  ;;  %v848_v61 = vmul.f32 0.2, %v830_v20  ;;  %v1758_v32 = vpack.c.bf16 %v1063_v29, %v1062_v40  ;;  %v1075_v40 = vld [vmem:[%s2727_s16 + $0xe8] sm:$0xff]  ;;  %v1465_v5 = vld [vmem:[%s2730_s19] ss:$0 sm:$0xff] }
 0x426   :  { %v855_v25 = vsel %vm843_vm8, %v835_v16, %v849_v22  ;;  %v895_v27 = vsel %vm892_vm7, %v893_v21, %v894_v24  ;;  %vm1251_vm8 = vcmask 31744  }
 0x427   :  { %v868_v28 = vmul.f32 %v2470_v26, %v855_v25  ;;  %v854_v62 = vsel %vm842_vm9, %v830_v20, %v848_v61  ;;  %900 = vrot.lane.b32.xlu1 %v899_v23, %s1842_s14  ;;  %1759 = vmatprep.subr.bf16.mxu1 %v1758_v32  ;;  %s1846_s14 = smov 56   ;;  %vm1357_vm9 = vcmask 1045504  }
 0x428   :  { %v867_v31 = vmul.f32 %v2470_v26, %v854_v62  ;;  %v1048_v26 = vld [vmem:[%s2727_s16 + $0x10] sm:$0xff]  ;;  %1761 = vmatpush3.bf16.msra.mxu1 %v1760_v7  ;;  %v1061_v7 = vld [vmem:[%s2727_s16 + $0x78] sm:$0xff] }
 0x429   :  { %v881_v49 = vadd.f32 %v2488_v34, %v868_v28  ;;  %1763 = vmatprep.subr.bf16.mxu1 %v1762_v8  ;;  %v1764_v48 = vpack.c.bf16 %v1049_v52, %v1048_v26  ;;  %v954_v26 = vld [vmem:[%s2726_s15] sm:$0x3] }
 0x42a   :  { %v880_v15 = vadd.f32 %v2488_v34, %v867_v31  ;;  %v1050_v34 = vld [vmem:[%s2727_s16 + $0x20] sm:$0xff]  ;;  %v1059_v31 = vld [vmem:[%s2727_s16 + $0x68] sm:$0xff]  ;;  %v959_v52 = vrot.slane %v954_v26, %v2307_v35 }
 0x42b   :  { %896 = vrot.lane.b32.xlu1 %v895_v27, %s1843_s9  ;;  %v916_v42 = vrot.slane %v881_v49, 4  ;;  %v1768_v56 = vpack.c.bf16 %v1051_v51, %v1050_v34  ;;  %v921_v57 = vrot.slane %v881_v49, 2  ;;  %v1784_v32 = vpack.c.bf16 %v1059_v31, %v1058_v30  ;;  %v1060_v49 = vld [vmem:[%s2727_s16 + $0x70] sm:$0xff]  ;;  %v1158_v34 = vld [vmem:[%s2729_s18] sm:$0xff]  ;;  %v1159_v35 = vld [vmem:[%s2729_s18 + $0x8] sm:$0xff] }
 0x42c   :  { %v915_v44 = vrot.slane %v880_v15, 4  ;;  %v909_v47 = vrot.slane %v880_v15, 6  ;;  %1765 = vmatpush3.bf16.msra.mxu1 %v1764_v48  ;;  %v1788_v8 = vpack.c.bf16 %v1061_v7, %v1060_v49  ;;  %v963_v15 = vrot.slane %v954_v26, %v2312_v38 }
 0x42d   :  { %1767 = vmatprep.subr.bf16.mxu1 %v1766_v50  ;;  %v1791_v38 = vpack.c.bf16 %v1159_v35, %v1158_v34  ;;  %v1847_v51 = vmov 0.0|0.0  }
 0x42e   :  { %v917_v37 = vsel %vm892_vm7, %v915_v44, %v916_v42  ;;  %v910_v53 = vsel %vm884_vm4, %v908_v43, %v909_v47  ;;  %1790 = vmatprep.subr.bf16.mxu0 %v1847_v51  ;;  %vm1263_vm7 = vcmask 97280  }
 0x42f   :  { %918 = vrot.lane.b32.xlu1 %v917_v37, %s1844_s6  ;;  %911 = vrot.lane.b32.xlu0 %v910_v53, %s1845_s0  ;;  %v1160_v37 = vld [vmem:[%s2729_s18 + $0x10] sm:$0xff]  ;;  %v1161_v53 = vld [vmem:[%s2729_s18 + $0x18] sm:$0xff] }
 0x430   :  { %1769 = vmatpush3.bf16.msra.mxu1 %v1768_v56  ;;  %v1794_v54 = vpack.c.bf16 %v1161_v53, %v1160_v37  ;;  %v1464_v56 = vld [vmem:[%s2728_s17] ss:$0 sm:$0xff] }
 0x431   :  { %1771 = vmatprep.subr.bf16.mxu1 %v1770_v58 }
 0x433   :  { %922 = vrot.lane.b32.xlu0 %v921_v57, %s1846_s14 }
 0x434   :  { %1773 = vmatpush3.bf16.msra.mxu1 %v1772_v2  ;;  %v1255_v2 = vld [vmem:[%s2731_s20 + $0x8] sm:$0xf] }
 0x435   :  { %1775 = vmatprep.subr.bf16.mxu1 %v1774_v3  ;;  %v1797_v3 = vpack.c.bf16 %v1255_v2, %v1254_v1 }
 0x438   :  { %1777 = vmatpush3.bf16.msra.mxu1 %v1776_v9 }
 0x439   :  { %1779 = vmatprep.subr.bf16.mxu1 %v1778_v10 }
 0x43c   :  { %1781 = vmatpush3.bf16.msra.mxu1 %v1780_v13 }
 0x491   :  { %v889_v18 = vpop.permute.xlu0 %888 }
 0x492   :  { %v925_v19 = vsel %vm84_vm0, %v2506_v45, %v889_v18  ;;  %v1074_v45 = vld [vmem:[%s2727_s16 + $0xe0] sm:$0xff] }
 0x493   :  { %v1782_v29 = vpack.c.bf16 %v1075_v40, %v1074_v45  ;;  %v1467_v18 = vld [vmem:[%s2732_s21] ss:$0 sm:$0xff] }
 0x495   :  { %v905_v16 = vpop.permute.xlu1 %904  ;;  %1783 = vmatprep.subr.bf16.mxu1 %v1782_v29 }
 0x496   :  { %1785 = vmatpush3.bf16.msra.mxu1 %v1784_v32 }
 0x497   :  { %1787 = vmatprep.subr.bf16.mxu1 %v1786_v4 }
 0x499   :  { %v901_v17 = vpop.permute.xlu1 %900 }
 0x49a   :  { %1789 = vmatpush3.bf16.msra.mxu1 %v1788_v8 }
 0x49d   :  { %v897_v20 = vpop.permute.xlu1 %896 }
 0x49e   :  { %v927_v21 = vsel %vm926_vm10, %v925_v19, %v897_v20  ;;  %vm1431_vm10 = vcmask 25600  }
 0x49f   :  { %v929_v22 = vsel %vm928_vm12, %v927_v21, %v901_v17  ;;  %v1345_v17 = vld [vmem:[%s2733_s22] sm:$0x3f]  ;;  %s1851_s22 = smov [#allocation2]  }
 0x4a0   :  { %v931_v23 = vsel %vm930_vm13, %v929_v22, %v905_v16  ;;  %s1439_s28 = sshll.u32 %s1851_s22, 4  ;;  %s1440_s28 = int_to_ptr.vmem [resolvable:$true] %s1439_s28 }
 0x4a1   :  { %v912_v24 = vpop.permute.xlu0 %911  ;;  %v919_v61 = vpop.permute.xlu1 %918  ;;  %s1815_s21 = scalar_lea.vmem %s1440_s28, 32  ;;  %p1820_p1 = scmp.lt.s32.totalorder %s1440_s28, %s1440_s28 }
 0x4a2   :  { %v933_v25 = vsel %vm932_vm14, %v931_v23, %v912_v24  ;;  %p1816_p0 = scmp.ne.s32.totalorder %s1440_s28, %s1815_s21  ;;  %p1821_p2 = scmp.lt.s32.totalorder %s1815_s21, %s1815_s21 }
 0x4a3   :  { %v935_v27 = vsel %vm934_vm15, %v933_v25, %v919_v61  ;;  %v1470_v25 = vld [vmem:[%s2734_s23] ss:$0 sm:$0xff] }
 0x4a4   :  { %p1822_p3 = por %p1821_p2, %p1820_p1 }
 0x4a5   :  { %v923_v28 = vpop.permute.xlu0 %922 }
 0x4a6   :  { %v937_v62 = vsel %vm936_vm1, %v935_v27, %v923_v28  ;;  %p1823_p4 = pnand %p1822_p3, %p1816_p0 }
 0x4a7   :  { %1463 = vmatmul.mubr.msk.f32.vlgmr.msra.gmra.mrb[30].mxu0 %vm724_vm11, %v937_v62 }
 0x4a8   :  { %1792 = vmatpush3.bf16.msra.mxu0 %v1791_v38  ;;  %1615 = vmatprep.mubr.msk.f32.mxu0 %vm1848_vm3, %v1839_v14 }
 0x4a9   :  { %1793 = vmatprep.subr.bf16.mxu0 %v1847_v51 }
 0x4ac   :  { %1795 = vmatpush3.bf16.msra.mxu0 %v1794_v54 }
 0x4ad   :  { %1796 = vmatprep.subr.bf16.mxu0 %v1847_v51 }
 0x57a   :  { %v1035_v36 = vpop.f32.mrb[30].mxu0 }
 0x57b   :  { %v1036_v39 = vadd.f32 %v1035_v36, %v959_v52  ;;  %v1037_v42 = vpop.f32.mrb[31].mxu0 }
 0x57c   :  { %v1038_v43 = vadd.f32 %v1037_v42, %v963_v15 }
 0x57d   :  { %v1042_v44 = vmul.f32 0.2, %v1036_v39  ;;  %vm1040_vm11 = vcmp.gt.f32.partialorder %v1036_v39, 0.0 }
 0x57e   :  { %v1043_v47 = vmul.f32 0.2, %v1038_v43  ;;  %vm1041_vm2 = vcmp.gt.f32.partialorder %v1038_v43, 0.0 }
 0x57f   :  { %v1044_v50 = vsel %vm1040_vm11, %v1036_v39, %v1042_v44 }
 0x580   :  { %v1045_v48 = vsel %vm1041_vm2, %v1038_v43, %v1043_v47 }
 0x581   :  { %1149 = vmatprep.mubr.f32.mxu1 %v1045_v48 }
 0x582   :  { %1150 = vmatmul.mubr.f32.vlgmr.msra.gmra.mrb[12].mxu1 %v1044_v50 }
 0x655   :  { %v1569_v55 = vpop.f32.mrb[12].mxu1 }
 0x656   :  { %v1570_v57 = vpop.f32.mrb[13].mxu1 }
 0x657   :  { %v1571_v58 = vadd.f32 %v1570_v57, %v1569_v55 }
 0x659   :  { %v1152_v60 = vadd.f32 %v1571_v58, %v1464_v56 }
 0x65b   :  { %vm1155_vm4 = vcmp.gt.f32.partialorder %v1152_v60, 0.0  ;;  %v1156_v63 = vmul.f32 0.2, %v1152_v60 }
 0x65d   :  { %v1157_v0 = vsel %vm1155_vm4, %v1152_v60, %v1156_v63 }
 0x65e   :  { %1616 = vmatmul.mubr.msk.f32.vlgmr.msra.gmra.mrb[32].mxu0 %vm930_vm13, %v1157_v0 }
 0x65f   :  { %1622 = vmatprep.mubr.msk.f32.mxu0 %vm1848_vm3, %v1839_v14  ;;  %1799 = vmatpush3.bf16.msk.msra.mxu0 %vm1798_vm6, %v1797_v3 }
 0x660   :  { %1625 = vmatprep.subr.mxu0 %v1839_v14 }
 0x731   :  { %v1238_v59 = vpop.f32.mrb[32].mxu0 }
 0x732   :  { %v1239_v6 = vadd.f32 %v1465_v5, %v1238_v59  ;;  %v1617_v41 = vpop.f32.mrb[33].mxu0 }
 0x734   :  { %v1247_v9 = vrot.slane %v1239_v6, 4  ;;  %v1243_v10 = vrot.slane %v1239_v6, 2 }
 0x736   :  { %1248 = vrot.lane.b32.xlu0 %v1247_v9, %s1840_s12  ;;  %1244 = vrot.lane.b32.xlu1 %v1243_v10, %s1850_s2 }
 0x7a8   :  { %v1249_v11 = vpop.permute.xlu0 %1248  ;;  %v1245_v12 = vpop.permute.xlu1 %1244 }
 0x7a9   :  { %v1252_v13 = vsel %vm1251_vm8, %v1239_v6, %v1245_v12 }
 0x7aa   :  { %v1253_v16 = vsel %vm84_vm0, %v1252_v13, %v1249_v11  ;;  %vm1353_vm0 = vcmask 48128  }
 0x7ab   :  { %1623 = vmatmul.mubr.msk.f32.vlgmr.msra.gmra.mrb[34].mxu0 %vm1263_vm7, %v1253_v16 }
 0x7ac   :  { %1627 = vmatprep.mubr.msk.f32.mxu0 %vm1848_vm3, %v1839_v14  ;;  %1626 = vmatpush3.msk.msra.mxu0 %vm1357_vm9, %v1345_v17 }
 0x87e   :  { %v1336_v19 = vpop.f32.mrb[34].mxu0 }
 0x87f   :  { %v1337_v20 = vadd.f32 %v1467_v18, %v1336_v19  ;;  %v1624_v21 = vpop.f32.mrb[35].mxu0 }
 0x881   :  { %v1341_v22 = vmul.f32 0.70710677, %v1337_v20  ;;  %v1340_v24 = vmul.f32 0.5, %v1337_v20 }
 0x883   :  { %1813 = verf.f32 %v1341_v22 }
 0x88d   :  { %v1814_v23 = vpop.eup %1813 }
 0x88e   :  { %v1343_v61 = vadd.f32 1.0, %v1814_v23 }
 0x890   :  { %v1344_v14 = vmul.f32 %v1343_v61, %v1340_v24 }
 0x892   :  { %1628 = vmatmul.mubr.msk.f32.vlgmr.msra.gmra.mrb[36].mxu0 %vm1353_vm0, %v1344_v14 }
 0x965   :  { %v1427_v27 = vpop.f32.mrb[36].mxu0 }
 0x966   :  { %v1428_v28 = vadd.f32 %v1470_v25, %v1427_v27  ;;  %v1629_v62 = vpop.f32.mrb[37].mxu0 }
 0x968   :  { %1432 = vst.msk [vmem:[#allocation2] sm:$0x3] %vm1431_vm10, %v1428_v28 }
 0x969   :  { %1826 = shalt.err (!%p1823_p4)
}
 0x96a   :  { %s1827_s6 = scalar_lea.hbm %s2735_s24, 32 }
 0x96b   :  { %p1828_p5 = scmp.ne.s32.totalorder %s2735_s24, %s1827_s6  ;;  %p1831_p6 = scmp.lt.u32.totalorder %s1827_s6, %s2735_s24 }
 0x96d   :  { %p1833_p7 = pnand %p1831_p6, %p1828_p5 }
 0x96f   :  { %1836 = shalt.err (!%p1833_p7)
}
 0x970   :  { %1442 = dma.vmem_to_hbm [thread:$0]  %s1440_s28, 32, %s2735_s24, [#allocation3]  }
 0x971   :  { %1837 = dma.done.wait [#allocation3], 32  }
 0x972   :  { %1838 = vsyncadd [#allocation3], 4294967264 }
 0x973   :  { %1446 = vsyncpa [#allocation3], 1 }

</bundles_post_ra>
